<compile_context>
chip_gen: v7x
topology: tpu7x:2x2x1
jax: 0.10.0
libtpu: 0.0.40
codegen_flags: <defaults>
</compile_context>

<pallas_src>
import functools

import jax
import jax.numpy as jnp
from jax.experimental import pallas as pl
from jax.experimental.pallas import tpu as pltpu


BP = 8  # padded batch (sublane) width; keep the kron block <= 8 (scaling guard)


def _round_up(x, m):
    return (x + m - 1) // m * m


# ---------------------------------------------------------------------------
# Fused Pallas kernel
# ---------------------------------------------------------------------------

def _fused_kernel(node_n, hidden, out_w,
                  cond_ref,                                # (node_n*BP, in_len)  bf16
                  w0, a0, s0, t0,                          # GraphConvBlock
                  w1a, a1a, s1a, t1a,                      # ResGCB #1 (block a)
                  w1b, a1b, s1b, t1b,                      # ResGCB #1 (block b)
                  w2a, a2a, s2a, t2a,                      # ResGCB #2 (block a)
                  w2b, a2b, s2b, t2b,                      # ResGCB #2 (block b)
                  wb_ref, sb_ref, tb_ref,                  # bases_p1 (bias folded)
                  r_ref,                                   # (S, BP) one-hot repeat
                  mwx_ref,                                 # (S, K*D) expanded weights
                  w1h_ref, s1h_ref, t1h_ref,               # head layer 1 (blend folded)
                  w2h_ref, b2h_ref,                        # head layer 2 (2*out_w wide)
                  eps_ref,                                 # (S, out_w), eps in lanes [0:z)
                  out_ref,                                 # (S, out_w) = [z|mean|logvar|0]
                  xb_vmem, bases_vmem):                    # VMEM scratch
    # --- condition encoder + bases: computed once, stay VMEM-resident ---------
    @pl.when(pl.program_id(0) == 0)
    def _():
        def gcn(x, w_r, a_r, s_r, t_r, res=None):
            # matmuls in bf16 (MXU native), epilogue in f32
            h = jnp.dot(x.astype(jnp.bfloat16), w_r[...],
                        preferred_element_type=jnp.float32)
            h = jnp.dot(a_r[...], h.astype(jnp.bfloat16),
                        preferred_element_type=jnp.float32)
            h = jnp.tanh(h * s_r[...] + t_r[...])
            return h if res is None else h + res

        x = gcn(cond_ref[...], w0, a0, s0, t0)
        h = gcn(x, w1a, a1a, s1a, t1a)
        x = gcn(h, w1b, a1b, s1b, t1b, res=x)
        h = gcn(x, w2a, a2a, s2a, t2a)
        x = gcn(h, w2b, a2b, s2b, t2b, res=x)              # (node_n*BP, hidden) f32

        # Relayout node-major rows -> per-batch flattened rows through VMEM
        # scratch (aligned 8-row slices), so bases_p1 is ONE K=node_n*hidden matmul.
        for n in range(node_n):
            xb_vmem[:, n * hidden:(n + 1) * hidden] = x[n * BP:(n + 1) * BP, :]

        acc = jnp.dot(xb_vmem[...].astype(jnp.bfloat16), wb_ref[...],
                      preferred_element_type=jnp.float32)
        bases_vmem[...] = jnp.tanh(acc * sb_ref[...] + tb_ref[...])   # (BP, K*D)

    # --- per-sample-tile work (pipelined along the grid) ----------------------
    # repeat_interleave == one-hot row gather; blend folded into the head-1 matmul
    rep = jnp.dot(r_ref[...], bases_vmem[...], preferred_element_type=jnp.float32)
    h1 = jnp.tanh(
        jnp.dot((rep * mwx_ref[...]).astype(jnp.bfloat16), w1h_ref[...],
                preferred_element_type=jnp.float32) * s1h_ref[...] + t1h_ref[...])
    mlz = jnp.dot(h1.astype(jnp.bfloat16), w2h_ref[...],
                  preferred_element_type=jnp.float32) + b2h_ref[...]   # (S, 2*out_w)
    # lane-dense epilogue: only 128-aligned lane slices, one unmasked store.
    out_ref[...] = mlz[:, 0:out_w] + jnp.exp(0.5 * mlz[:, out_w:2 * out_w]) * eps_ref[...]


# ---------------------------------------------------------------------------
# Host-side parameter folding (done once, outside the hot path)
# ---------------------------------------------------------------------------

def prepare_fused_params(params, base_num, z_dim):
    f32, bf16 = jnp.float32, jnp.bfloat16
    eye = jnp.eye(BP, dtype=f32)

    def prep_gcn(p):
        w, att, bias, scale, shift = p
        n_out, f_out = att.shape[1], w.shape[1]
        a_blk = jnp.kron(att.T, eye)                                   # (n_out*BP, n_in*BP)
        s_rows = jnp.repeat(scale.reshape(n_out, f_out), BP, axis=0)   # (n_out*BP, f_out)
        t_rows = (jnp.repeat(shift.reshape(n_out, f_out), BP, axis=0)
                  + s_rows * bias[None, :])                            # GraphConv bias folded
        return (w.astype(bf16), a_blk.astype(bf16), s_rows, t_rows)

    gcn = [prep_gcn(params[k]) for k in ("gcb0", "gcb1a", "gcb1b", "gcb2a", "gcb2b")]

    wb, bb, sb, tb = params["bases"]
    sb2 = sb.reshape(1, -1)
    tb2 = tb.reshape(1, -1) + sb2 * bb.reshape(1, -1)                  # Linear bias folded

    w1m, b1m, sm, tm, w2m, b2m = params["mean"]
    w1l, b1l, sl, tl, w2l, b2l = params["logvar"]
    hdim = w1m.shape[1]
    hcat = 2 * hdim
    w1cat = jnp.concatenate([w1m, w1l], axis=1)                        # (base_dim, hcat)
    w1t = jnp.tile(w1cat, (base_num, 1)).astype(bf16)                  # blend folded in
    s1 = jnp.concatenate([sm, sl]).reshape(1, hcat)
    t1 = (jnp.concatenate([tm, tl]).reshape(1, hcat)
          + s1 * jnp.concatenate([b1m, b1l]).reshape(1, hcat))

    out_w = max(128, _round_up(3 * z_dim, 128))
    # second head matmul emits [mean | mean | logvar | 0 || logvar | 0...]
    w2h = jnp.zeros((hcat, 2 * out_w), f32)
    w2h = w2h.at[:hdim, 0:z_dim].set(w2m)                  # z slot (mean part)
    w2h = w2h.at[:hdim, z_dim:2 * z_dim].set(w2m)          # mean slot
    w2h = w2h.at[hdim:, 2 * z_dim:3 * z_dim].set(w2l)      # logvar slot
    w2h = w2h.at[hdim:, out_w:out_w + z_dim].set(w2l)      # exp-input (for z) slot
    b2h = jnp.zeros((1, 2 * out_w), f32)
    b2h = b2h.at[0, 0:z_dim].set(b2m).at[0, z_dim:2 * z_dim].set(b2m)
    b2h = b2h.at[0, 2 * z_dim:3 * z_dim].set(b2l).at[0, out_w:out_w + z_dim].set(b2l)

    return {"gcn": gcn,
            "bases": (wb.astype(bf16), sb2, tb2),
            "heads": (w1t, s1, t1, w2h.astype(bf16), b2h)}


# ---------------------------------------------------------------------------
# Forward pass: one pallas_call; everything else is layout glue
# ---------------------------------------------------------------------------

@functools.partial(jax.jit, static_argnames=(
    "node_n", "hidden", "base_num", "base_dim", "z_dim", "head", "sample_tile"))
def diverse_sampling_forward(fused, condition, repeated_eps, many_weights, *,
                             node_n, hidden, base_num, base_dim, z_dim, head,
                             sample_tile=8):
    f32, bf16 = jnp.float32, jnp.bfloat16
    b = condition.shape[0]
    in_len = condition.shape[2]
    B = b * head
    assert b <= BP, "scaling guard: grid over batch chunks instead of growing the kron block"
    kd = base_num * base_dim
    out_w = max(128, _round_up(3 * z_dim, 128))
    B_pad = _round_up(B, sample_tile)
    n_blk = B_pad // sample_tile

    # ---- layout glue (all tiny) -------------------------------------------
    # node-major, batch zero-padded to 8 sublanes: row = node*BP + batch
    cond_p = jnp.zeros((BP, node_n, in_len), f32).at[:b].set(condition)
    cond2d = jnp.transpose(cond_p, (1, 0, 2)).reshape(node_n * BP, in_len).astype(bf16)

    # one-hot repeat_interleave matrix over padded samples (padded rows all-zero)
    rows = jnp.arange(B_pad)
    r_mat = ((rows[:, None] // head == jnp.arange(BP)[None, :])
             & (rows[:, None] < B)).astype(f32)                        # (B_pad, BP)

    # many_weights expanded to lane width so the blend folds into the head matmul
    mw2 = many_weights.reshape(B, base_num)
    mwx = jnp.zeros((B_pad, kd), f32).at[:B].set(jnp.repeat(mw2, base_dim, axis=1))

    # eps padded into a lane-dense slab; only the z-slot lanes are non-zero
    eps_full = jnp.zeros((B_pad, out_w), f32).at[:B, :z_dim].set(repeated_eps)

    # ---- inputs + BlockSpecs ------------------------------------------------
    inputs, in_specs = [], []

    def add_const(a):          # loaded once, stays VMEM-resident across the grid
        inputs.append(a)
        in_specs.append(pl.BlockSpec(a.shape, lambda s: (0, 0)))

    def add_sample(a):         # pipelined along the sample-tile grid axis
        inputs.append(a)
        in_specs.append(pl.BlockSpec((sample_tile, a.shape[1]), lambda s: (s, 0)))

    add_const(cond2d)
    for g in fused["gcn"]:
        for a in g:
            add_const(a)
    for a in fused["bases"]:
        add_const(a)
    add_sample(r_mat)
    add_sample(mwx)
    for a in fused["heads"]:
        add_const(a)
    add_sample(eps_full)

    w1t = fused["heads"][0]
    hcat = w1t.shape[1]

    # advisory cost estimate
    nb = node_n * BP
    flops = 2 * nb * in_len * hidden + 2 * nb * nb * hidden
    flops += 4 * (2 * nb * hidden * hidden + 2 * nb * nb * hidden)
    flops += 2 * BP * (node_n * hidden) * kd
    flops += n_blk * (2 * sample_tile * BP * kd
                      + 2 * sample_tile * kd * hcat
                      + 2 * sample_tile * hcat * 2 * out_w)
    transc = 5 * nb * hidden + BP * kd + n_blk * sample_tile * (hcat + out_w)
    bytes_acc = sum(int(a.size) * a.dtype.itemsize for a in inputs) + B_pad * out_w * 4
    cost = pl.CostEstimate(flops=int(flops), transcendentals=int(transc),
                           bytes_accessed=int(bytes_acc))

    kernel = functools.partial(_fused_kernel, node_n, hidden, out_w)

    # TODO(synk): on v7x, split the grid per core (recompute bases per core) so this
    # axis can be "parallel" across both TensorCores; kept "arbitrary" here because
    # the bases scratch is carried across sample tiles.
    out = pl.pallas_call(
        kernel,
        out_shape=jax.ShapeDtypeStruct((B_pad, out_w), f32),
        grid_spec=pltpu.PrefetchScalarGridSpec(
            num_scalar_prefetch=0,
            grid=(n_blk,),
            in_specs=in_specs,
            out_specs=pl.BlockSpec((sample_tile, out_w), lambda s: (s, 0)),
            scratch_shapes=[pltpu.VMEM((BP, node_n * hidden), f32),
                            pltpu.VMEM((BP, kd), f32)]),
        compiler_params=pltpu.CompilerParams(dimension_semantics=("arbitrary",)),
        cost_estimate=cost,
    )(*inputs)

    all_z = out[:B, 0:z_dim]
    all_mean = out[:B, z_dim:2 * z_dim]
    all_logvar = out[:B, 2 * z_dim:3 * z_dim]
    return all_z, all_mean, all_logvar


# ---------------------------------------------------------------------------
# Synthetic, deterministic parameters (BatchNorm folded to scale/shift, eval mode)
# ---------------------------------------------------------------------------

def _bn_fold(key, n):
    k1, k2, k3, k4 = jax.random.split(key, 4)
    gamma = 1.0 + 0.1 * jax.random.normal(k1, (n,), jnp.float32)
    beta = 0.1 * jax.random.normal(k2, (n,), jnp.float32)
    rmean = 0.1 * jax.random.normal(k3, (n,), jnp.float32)
    rvar = 1.0 + 0.1 * jax.random.uniform(k4, (n,), jnp.float32)
    eps = 1e-5
    scale = gamma / jnp.sqrt(rvar + eps)
    shift = beta - rmean * scale
    return scale, shift


def _gcn_params(key, n_in, n_out, f_in, f_out):
    k1, k2, k3, k4 = jax.random.split(key, 4)
    w = 0.1 * jax.random.normal(k1, (f_in, f_out), jnp.float32)
    att = 0.1 * jax.random.normal(k2, (n_in, n_out), jnp.float32)
    bias = 0.05 * jax.random.normal(k3, (f_out,), jnp.float32)
    scale, shift = _bn_fold(k4, n_out * f_out)
    return (w, att, bias, scale, shift)


def make_params(key, node_n, hidden, base_dim, z_dim, dct_n, base_num):
    in_len = 3 * dct_n
    keys = jax.random.split(key, 16)
    params = {
        "gcb0": _gcn_params(keys[0], node_n, node_n, in_len, hidden),
        "gcb1a": _gcn_params(keys[1], node_n, node_n, hidden, hidden),
        "gcb1b": _gcn_params(keys[2], node_n, node_n, hidden, hidden),
        "gcb2a": _gcn_params(keys[3], node_n, node_n, hidden, hidden),
        "gcb2b": _gcn_params(keys[4], node_n, node_n, hidden, hidden),
    }
    kw, kb, kbn = jax.random.split(keys[5], 3)
    wb = 0.05 * jax.random.normal(kw, (node_n * hidden, base_num * base_dim), jnp.float32)
    bb = 0.05 * jax.random.normal(kb, (base_num * base_dim,), jnp.float32)
    sb, tb = _bn_fold(kbn, base_num * base_dim)
    params["bases"] = (wb, bb, sb, tb)

    def head_params(k):
        k1, k2, k3, k4, k5 = jax.random.split(k, 5)
        w1 = 0.1 * jax.random.normal(k1, (base_dim, 64), jnp.float32)
        b1 = 0.05 * jax.random.normal(k2, (64,), jnp.float32)
        s1, t1 = _bn_fold(k3, 64)
        w2 = 0.1 * jax.random.normal(k4, (64, z_dim), jnp.float32)
        b2 = 0.05 * jax.random.normal(k5, (z_dim,), jnp.float32)
        return (w1, b1, s1, t1, w2, b2)

    params["mean"] = head_params(keys[6])
    params["logvar"] = head_params(keys[7])
    return params


# ---------------------------------------------------------------------------
# Pure-JAX f32 reference (unfused, unfolded layout) for correctness checking
# ---------------------------------------------------------------------------

def reference_forward(params, condition, repeated_eps, many_weights,
                      base_num, base_dim, head):
    def gcn_ref(x, p, residual=None):
        w, att, bias, scale, shift = p
        n_out = att.shape[1]
        f_out = w.shape[1]
        xw = jnp.einsum('bnf,fk->bnk', x, w)
        h = jnp.einsum('on,bnk->bok', att.T, xw) + bias
        h = jnp.tanh(h * scale.reshape(n_out, f_out) + shift.reshape(n_out, f_out))
        return h if residual is None else h + residual

    x = gcn_ref(condition, params["gcb0"])
    h = gcn_ref(x, params["gcb1a"])
    x = gcn_ref(h, params["gcb1b"], x)
    h = gcn_ref(x, params["gcb2a"])
    x = gcn_ref(h, params["gcb2b"], x)

    b = condition.shape[0]
    wb, bb, sb, tb = params["bases"]
    bases = jnp.tanh(((x.reshape(b, -1) @ wb) + bb) * sb + tb)
    bases = bases.reshape(b, base_num, base_dim)
    rep = jnp.repeat(bases, head, axis=0)
    blend = jnp.matmul(many_weights, rep).reshape(-1, base_dim)

    def head_ref(xx, p):
        w1, b1, s1, t1, w2, b2 = p
        return jnp.tanh((xx @ w1 + b1) * s1 + t1) @ w2 + b2

    mean = head_ref(blend, params["mean"])
    logvar = head_ref(blend, params["logvar"])
    z = jnp.exp(0.5 * logvar) * repeated_eps + mean
    return z, mean, logvar


# ---------------------------------------------------------------------------
# Example run
# ---------------------------------------------------------------------------

if __name__ == "__main__":
    node_n, hidden, base_dim, z_dim, dct_n, base_num = 16, 64, 32, 32, 5, 4
    multi_modal_head = 3
    b = 2
    B = b * multi_modal_head
    in_len = 3 * dct_n

    key = jax.random.PRNGKey(0)
    kp, kc, kw, ke = jax.random.split(key, 4)

    params = make_params(kp, node_n, hidden, base_dim, z_dim, dct_n, base_num)
    fused = prepare_fused_params(params, base_num, z_dim)

    condition = jax.random.normal(kc, (b, node_n, in_len), jnp.float32)
    many_weights = jax.nn.softmax(
        jax.random.normal(kw, (B, 1, base_num), jnp.float32), axis=-1)
    repeated_eps = jax.random.normal(ke, (B, z_dim), jnp.float32)

    all_z, all_mean, all_logvar = diverse_sampling_forward(
        fused, condition, repeated_eps, many_weights,
        node_n=node_n, hidden=hidden, base_num=base_num, base_dim=base_dim,
        z_dim=z_dim, head=multi_modal_head)
    jax.block_until_ready((all_z, all_mean, all_logvar))

    ref_z, ref_mean, ref_logvar = reference_forward(
        params, condition, repeated_eps, many_weights,
        base_num, base_dim, multi_modal_head)

    assert all_z.shape == (B, z_dim)
    assert all_mean.shape == (B, z_dim)
    assert all_logvar.shape == (B, z_dim)
    # bf16 matmul operands (f32 accumulate + f32 epilogues) vs a pure-f32 reference:
    # observed error is a few 1e-3; 2e-2 leaves margin.
    assert bool(jnp.allclose(all_z, ref_z, rtol=2e-2, atol=2e-2))
    assert bool(jnp.allclose(all_mean, ref_mean, rtol=2e-2, atol=2e-2))
    assert bool(jnp.allclose(all_logvar, ref_logvar, rtol=2e-2, atol=2e-2))
    print("KERNEL_OK")
</pallas_src>

<mosaic_0001>
module attributes {stable_mosaic.version = 11 : i64} {
  func.func @_fused_kernel(%arg0: i32, %arg1: memref<128x15xbf16, #tpu.memory_space<vmem>>, %arg2: memref<15x64xbf16, #tpu.memory_space<vmem>>, %arg3: memref<128x128xbf16, #tpu.memory_space<vmem>>, %arg4: memref<128x64xf32, #tpu.memory_space<vmem>>, %arg5: memref<128x64xf32, #tpu.memory_space<vmem>>, %arg6: memref<64x64xbf16, #tpu.memory_space<vmem>>, %arg7: memref<128x128xbf16, #tpu.memory_space<vmem>>, %arg8: memref<128x64xf32, #tpu.memory_space<vmem>>, %arg9: memref<128x64xf32, #tpu.memory_space<vmem>>, %arg10: memref<64x64xbf16, #tpu.memory_space<vmem>>, %arg11: memref<128x128xbf16, #tpu.memory_space<vmem>>, %arg12: memref<128x64xf32, #tpu.memory_space<vmem>>, %arg13: memref<128x64xf32, #tpu.memory_space<vmem>>, %arg14: memref<64x64xbf16, #tpu.memory_space<vmem>>, %arg15: memref<128x128xbf16, #tpu.memory_space<vmem>>, %arg16: memref<128x64xf32, #tpu.memory_space<vmem>>, %arg17: memref<128x64xf32, #tpu.memory_space<vmem>>, %arg18: memref<64x64xbf16, #tpu.memory_space<vmem>>, %arg19: memref<128x128xbf16, #tpu.memory_space<vmem>>, %arg20: memref<128x64xf32, #tpu.memory_space<vmem>>, %arg21: memref<128x64xf32, #tpu.memory_space<vmem>>, %arg22: memref<1024x128xbf16, #tpu.memory_space<vmem>>, %arg23: memref<1x128xf32, #tpu.memory_space<vmem>>, %arg24: memref<1x128xf32, #tpu.memory_space<vmem>>, %arg25: memref<8x8xf32, #tpu.memory_space<vmem>>, %arg26: memref<8x128xf32, #tpu.memory_space<vmem>>, %arg27: memref<128x128xbf16, #tpu.memory_space<vmem>>, %arg28: memref<1x128xf32, #tpu.memory_space<vmem>>, %arg29: memref<1x128xf32, #tpu.memory_space<vmem>>, %arg30: memref<128x256xbf16, #tpu.memory_space<vmem>>, %arg31: memref<1x256xf32, #tpu.memory_space<vmem>>, %arg32: memref<8x128xf32, #tpu.memory_space<vmem>>, %arg33: memref<8x128xf32, #tpu.memory_space<vmem>>, %arg34: memref<8x1024xf32, #tpu.memory_space<vmem>>, %arg35: memref<8x128xf32, #tpu.memory_space<vmem>>) attributes {dimension_semantics = [#tpu.dimension_semantics<arbitrary>], iteration_bounds = array<i64: 1>, scalar_prefetch = 0 : i64, scratch_operands = 2 : i64, tpu.core_type = #tpu.core_type<tc>, window_params = [{pipeline_mode = #tpu.pipeline_mode<synchronous>, transform_indices = @transform_0, window_bounds = array<i64: 128, 15>}, {pipeline_mode = #tpu.pipeline_mode<synchronous>, transform_indices = @transform_1, window_bounds = array<i64: 15, 64>}, {pipeline_mode = #tpu.pipeline_mode<synchronous>, transform_indices = @transform_2, window_bounds = array<i64: 128, 128>}, {pipeline_mode = #tpu.pipeline_mode<synchronous>, transform_indices = @transform_3, window_bounds = array<i64: 128, 64>}, {pipeline_mode = #tpu.pipeline_mode<synchronous>, transform_indices = @transform_4, window_bounds = array<i64: 128, 64>}, {pipeline_mode = #tpu.pipeline_mode<synchronous>, transform_indices = @transform_5, window_bounds = array<i64: 64, 64>}, {pipeline_mode = #tpu.pipeline_mode<synchronous>, transform_indices = @transform_6, window_bounds = array<i64: 128, 128>}, {pipeline_mode = #tpu.pipeline_mode<synchronous>, transform_indices = @transform_7, window_bounds = array<i64: 128, 64>}, {pipeline_mode = #tpu.pipeline_mode<synchronous>, transform_indices = @transform_8, window_bounds = array<i64: 128, 64>}, {pipeline_mode = #tpu.pipeline_mode<synchronous>, transform_indices = @transform_9, window_bounds = array<i64: 64, 64>}, {pipeline_mode = #tpu.pipeline_mode<synchronous>, transform_indices = @transform_10, window_bounds = array<i64: 128, 128>}, {pipeline_mode = #tpu.pipeline_mode<synchronous>, transform_indices = @transform_11, window_bounds = array<i64: 128, 64>}, {pipeline_mode = #tpu.pipeline_mode<synchronous>, transform_indices = @transform_12, window_bounds = array<i64: 128, 64>}, {pipeline_mode = #tpu.pipeline_mode<synchronous>, transform_indices = @transform_13, window_bounds = array<i64: 64, 64>}, {pipeline_mode = #tpu.pipeline_mode<synchronous>, transform_indices = @transform_14, window_bounds = array<i64: 128, 128>}, {pipeline_mode = #tpu.pipeline_mode<synchronous>, transform_indices = @transform_15, window_bounds = array<i64: 128, 64>}, {pipeline_mode = #tpu.pipeline_mode<synchronous>, transform_indices = @transform_16, window_bounds = array<i64: 128, 64>}, {pipeline_mode = #tpu.pipeline_mode<synchronous>, transform_indices = @transform_17, window_bounds = array<i64: 64, 64>}, {pipeline_mode = #tpu.pipeline_mode<synchronous>, transform_indices = @transform_18, window_bounds = array<i64: 128, 128>}, {pipeline_mode = #tpu.pipeline_mode<synchronous>, transform_indices = @transform_19, window_bounds = array<i64: 128, 64>}, {pipeline_mode = #tpu.pipeline_mode<synchronous>, transform_indices = @transform_20, window_bounds = array<i64: 128, 64>}, {pipeline_mode = #tpu.pipeline_mode<synchronous>, transform_indices = @transform_21, window_bounds = array<i64: 1024, 128>}, {pipeline_mode = #tpu.pipeline_mode<synchronous>, transform_indices = @transform_22, window_bounds = array<i64: 1, 128>}, {pipeline_mode = #tpu.pipeline_mode<synchronous>, transform_indices = @transform_23, window_bounds = array<i64: 1, 128>}, {transform_indices = @transform_24, window_bounds = array<i64: 8, 8>}, {transform_indices = @transform_25, window_bounds = array<i64: 8, 128>}, {pipeline_mode = #tpu.pipeline_mode<synchronous>, transform_indices = @transform_26, window_bounds = array<i64: 128, 128>}, {pipeline_mode = #tpu.pipeline_mode<synchronous>, transform_indices = @transform_27, window_bounds = array<i64: 1, 128>}, {pipeline_mode = #tpu.pipeline_mode<synchronous>, transform_indices = @transform_28, window_bounds = array<i64: 1, 128>}, {pipeline_mode = #tpu.pipeline_mode<synchronous>, transform_indices = @transform_29, window_bounds = array<i64: 128, 256>}, {pipeline_mode = #tpu.pipeline_mode<synchronous>, transform_indices = @transform_30, window_bounds = array<i64: 1, 256>}, {transform_indices = @transform_31, window_bounds = array<i64: 8, 128>}, {transform_indices = @transform_32, window_bounds = array<i64: 8, 128>}]} {
    %c0_i32 = arith.constant 0 : i32
    %0 = arith.cmpi eq, %arg0, %c0_i32 : i32
    %1 = arith.extui %0 : i1 to i32
    %c0_i32_0 = arith.constant 0 : i32
    %2 = arith.cmpi ne, %1, %c0_i32_0 : i32
    scf.if %2 {
      %c0_23 = arith.constant 0 : index
      %c0_24 = arith.constant 0 : index
      %33 = vector.load %arg1[%c0_23, %c0_24] : memref<128x15xbf16, #tpu.memory_space<vmem>>, vector<128x15xbf16>
      %c0_25 = arith.constant 0 : index
      %c0_26 = arith.constant 0 : index
      %34 = vector.load %arg2[%c0_25, %c0_26] : memref<15x64xbf16, #tpu.memory_space<vmem>>, vector<15x64xbf16>
      %cst_27 = arith.constant dense<0.000000e+00> : vector<128x64xf32>
      %35 = tpu.matmul %33, %34, %cst_27 {dimension_numbers = #tpu.dot_dimension_numbers<[1], [0], [0], [1], [0, 0, 1, 1], [], []>} : vector<128x15xbf16>, vector<15x64xbf16>, vector<128x64xf32> -> vector<128x64xf32>
      %c0_28 = arith.constant 0 : index
      %c0_29 = arith.constant 0 : index
      %36 = vector.load %arg3[%c0_28, %c0_29] : memref<128x128xbf16, #tpu.memory_space<vmem>>, vector<128x128xbf16>
      %37 = arith.truncf %35 : vector<128x64xf32> to vector<128x64xbf16>
      %cst_30 = arith.constant dense<0.000000e+00> : vector<128x64xf32>
      %38 = tpu.matmul %36, %37, %cst_30 {dimension_numbers = #tpu.dot_dimension_numbers<[1], [0], [0], [1], [0, 0, 1, 1], [], []>} : vector<128x128xbf16>, vector<128x64xbf16>, vector<128x64xf32> -> vector<128x64xf32>
      %c0_31 = arith.constant 0 : index
      %c0_32 = arith.constant 0 : index
      %39 = vector.load %arg4[%c0_31, %c0_32] : memref<128x64xf32, #tpu.memory_space<vmem>>, vector<128x64xf32>
      %40 = arith.mulf %38, %39 : vector<128x64xf32>
      %c0_33 = arith.constant 0 : index
      %c0_34 = arith.constant 0 : index
      %41 = vector.load %arg5[%c0_33, %c0_34] : memref<128x64xf32, #tpu.memory_space<vmem>>, vector<128x64xf32>
      %42 = arith.addf %40, %41 : vector<128x64xf32>
      %43 = math.tanh %42 : vector<128x64xf32>
      %44 = arith.truncf %43 : vector<128x64xf32> to vector<128x64xbf16>
      %c0_35 = arith.constant 0 : index
      %c0_36 = arith.constant 0 : index
      %45 = vector.load %arg6[%c0_35, %c0_36] : memref<64x64xbf16, #tpu.memory_space<vmem>>, vector<64x64xbf16>
      %cst_37 = arith.constant dense<0.000000e+00> : vector<128x64xf32>
      %46 = tpu.matmul %44, %45, %cst_37 {dimension_numbers = #tpu.dot_dimension_numbers<[1], [0], [0], [1], [0, 0, 1, 1], [], []>} : vector<128x64xbf16>, vector<64x64xbf16>, vector<128x64xf32> -> vector<128x64xf32>
      %c0_38 = arith.constant 0 : index
      %c0_39 = arith.constant 0 : index
      %47 = vector.load %arg7[%c0_38, %c0_39] : memref<128x128xbf16, #tpu.memory_space<vmem>>, vector<128x128xbf16>
      %48 = arith.truncf %46 : vector<128x64xf32> to vector<128x64xbf16>
      %cst_40 = arith.constant dense<0.000000e+00> : vector<128x64xf32>
      %49 = tpu.matmul %47, %48, %cst_40 {dimension_numbers = #tpu.dot_dimension_numbers<[1], [0], [0], [1], [0, 0, 1, 1], [], []>} : vector<128x128xbf16>, vector<128x64xbf16>, vector<128x64xf32> -> vector<128x64xf32>
      %c0_41 = arith.constant 0 : index
      %c0_42 = arith.constant 0 : index
      %50 = vector.load %arg8[%c0_41, %c0_42] : memref<128x64xf32, #tpu.memory_space<vmem>>, vector<128x64xf32>
      %51 = arith.mulf %49, %50 : vector<128x64xf32>
      %c0_43 = arith.constant 0 : index
      %c0_44 = arith.constant 0 : index
      %52 = vector.load %arg9[%c0_43, %c0_44] : memref<128x64xf32, #tpu.memory_space<vmem>>, vector<128x64xf32>
      %53 = arith.addf %51, %52 : vector<128x64xf32>
      %54 = math.tanh %53 : vector<128x64xf32>
      %55 = arith.truncf %54 : vector<128x64xf32> to vector<128x64xbf16>
      %c0_45 = arith.constant 0 : index
      %c0_46 = arith.constant 0 : index
      %56 = vector.load %arg10[%c0_45, %c0_46] : memref<64x64xbf16, #tpu.memory_space<vmem>>, vector<64x64xbf16>
      %cst_47 = arith.constant dense<0.000000e+00> : vector<128x64xf32>
      %57 = tpu.matmul %55, %56, %cst_47 {dimension_numbers = #tpu.dot_dimension_numbers<[1], [0], [0], [1], [0, 0, 1, 1], [], []>} : vector<128x64xbf16>, vector<64x64xbf16>, vector<128x64xf32> -> vector<128x64xf32>
      %c0_48 = arith.constant 0 : index
      %c0_49 = arith.constant 0 : index
      %58 = vector.load %arg11[%c0_48, %c0_49] : memref<128x128xbf16, #tpu.memory_space<vmem>>, vector<128x128xbf16>
      %59 = arith.truncf %57 : vector<128x64xf32> to vector<128x64xbf16>
      %cst_50 = arith.constant dense<0.000000e+00> : vector<128x64xf32>
      %60 = tpu.matmul %58, %59, %cst_50 {dimension_numbers = #tpu.dot_dimension_numbers<[1], [0], [0], [1], [0, 0, 1, 1], [], []>} : vector<128x128xbf16>, vector<128x64xbf16>, vector<128x64xf32> -> vector<128x64xf32>
      %c0_51 = arith.constant 0 : index
      %c0_52 = arith.constant 0 : index
      %61 = vector.load %arg12[%c0_51, %c0_52] : memref<128x64xf32, #tpu.memory_space<vmem>>, vector<128x64xf32>
      %62 = arith.mulf %60, %61 : vector<128x64xf32>
      %c0_53 = arith.constant 0 : index
      %c0_54 = arith.constant 0 : index
      %63 = vector.load %arg13[%c0_53, %c0_54] : memref<128x64xf32, #tpu.memory_space<vmem>>, vector<128x64xf32>
      %64 = arith.addf %62, %63 : vector<128x64xf32>
      %65 = math.tanh %64 : vector<128x64xf32>
      %66 = arith.addf %65, %43 : vector<128x64xf32>
      %67 = arith.truncf %66 : vector<128x64xf32> to vector<128x64xbf16>
      %c0_55 = arith.constant 0 : index
      %c0_56 = arith.constant 0 : index
      %68 = vector.load %arg14[%c0_55, %c0_56] : memref<64x64xbf16, #tpu.memory_space<vmem>>, vector<64x64xbf16>
      %cst_57 = arith.constant dense<0.000000e+00> : vector<128x64xf32>
      %69 = tpu.matmul %67, %68, %cst_57 {dimension_numbers = #tpu.dot_dimension_numbers<[1], [0], [0], [1], [0, 0, 1, 1], [], []>} : vector<128x64xbf16>, vector<64x64xbf16>, vector<128x64xf32> -> vector<128x64xf32>
      %c0_58 = arith.constant 0 : index
      %c0_59 = arith.constant 0 : index
      %70 = vector.load %arg15[%c0_58, %c0_59] : memref<128x128xbf16, #tpu.memory_space<vmem>>, vector<128x128xbf16>
      %71 = arith.truncf %69 : vector<128x64xf32> to vector<128x64xbf16>
      %cst_60 = arith.constant dense<0.000000e+00> : vector<128x64xf32>
      %72 = tpu.matmul %70, %71, %cst_60 {dimension_numbers = #tpu.dot_dimension_numbers<[1], [0], [0], [1], [0, 0, 1, 1], [], []>} : vector<128x128xbf16>, vector<128x64xbf16>, vector<128x64xf32> -> vector<128x64xf32>
      %c0_61 = arith.constant 0 : index
      %c0_62 = arith.constant 0 : index
      %73 = vector.load %arg16[%c0_61, %c0_62] : memref<128x64xf32, #tpu.memory_space<vmem>>, vector<128x64xf32>
      %74 = arith.mulf %72, %73 : vector<128x64xf32>
      %c0_63 = arith.constant 0 : index
      %c0_64 = arith.constant 0 : index
      %75 = vector.load %arg17[%c0_63, %c0_64] : memref<128x64xf32, #tpu.memory_space<vmem>>, vector<128x64xf32>
      %76 = arith.addf %74, %75 : vector<128x64xf32>
      %77 = math.tanh %76 : vector<128x64xf32>
      %78 = arith.truncf %77 : vector<128x64xf32> to vector<128x64xbf16>
      %c0_65 = arith.constant 0 : index
      %c0_66 = arith.constant 0 : index
      %79 = vector.load %arg18[%c0_65, %c0_66] : memref<64x64xbf16, #tpu.memory_space<vmem>>, vector<64x64xbf16>
      %cst_67 = arith.constant dense<0.000000e+00> : vector<128x64xf32>
      %80 = tpu.matmul %78, %79, %cst_67 {dimension_numbers = #tpu.dot_dimension_numbers<[1], [0], [0], [1], [0, 0, 1, 1], [], []>} : vector<128x64xbf16>, vector<64x64xbf16>, vector<128x64xf32> -> vector<128x64xf32>
      %c0_68 = arith.constant 0 : index
      %c0_69 = arith.constant 0 : index
      %81 = vector.load %arg19[%c0_68, %c0_69] : memref<128x128xbf16, #tpu.memory_space<vmem>>, vector<128x128xbf16>
      %82 = arith.truncf %80 : vector<128x64xf32> to vector<128x64xbf16>
      %cst_70 = arith.constant dense<0.000000e+00> : vector<128x64xf32>
      %83 = tpu.matmul %81, %82, %cst_70 {dimension_numbers = #tpu.dot_dimension_numbers<[1], [0], [0], [1], [0, 0, 1, 1], [], []>} : vector<128x128xbf16>, vector<128x64xbf16>, vector<128x64xf32> -> vector<128x64xf32>
      %c0_71 = arith.constant 0 : index
      %c0_72 = arith.constant 0 : index
      %84 = vector.load %arg20[%c0_71, %c0_72] : memref<128x64xf32, #tpu.memory_space<vmem>>, vector<128x64xf32>
      %85 = arith.mulf %83, %84 : vector<128x64xf32>
      %c0_73 = arith.constant 0 : index
      %c0_74 = arith.constant 0 : index
      %86 = vector.load %arg21[%c0_73, %c0_74] : memref<128x64xf32, #tpu.memory_space<vmem>>, vector<128x64xf32>
      %87 = arith.addf %85, %86 : vector<128x64xf32>
      %88 = math.tanh %87 : vector<128x64xf32>
      %89 = arith.addf %88, %66 : vector<128x64xf32>
      %90 = vector.extract_strided_slice %89 {offsets = [0, 0], sizes = [8, 64], strides = [1, 1]} : vector<128x64xf32> to vector<8x64xf32>
      %c0_75 = arith.constant 0 : index
      %c0_76 = arith.constant 0 : index
      %91 = vector.load %arg34[%c0_75, %c0_76] : memref<8x1024xf32, #tpu.memory_space<vmem>>, vector<8x64xf32>
      tpu.vector_store %arg34[%c0_75, %c0_76], %90 {strides = array<i32>} : memref<8x1024xf32, #tpu.memory_space<vmem>>, vector<8x64xf32>,
      %92 = vector.extract_strided_slice %89 {offsets = [8, 0], sizes = [8, 64], strides = [1, 1]} : vector<128x64xf32> to vector<8x64xf32>
      %c0_77 = arith.constant 0 : index
      %c64 = arith.constant 64 : index
      %93 = vector.load %arg34[%c0_77, %c64] : memref<8x1024xf32, #tpu.memory_space<vmem>>, vector<8x64xf32>
      tpu.vector_store %arg34[%c0_77, %c64], %92 {strides = array<i32>} : memref<8x1024xf32, #tpu.memory_space<vmem>>, vector<8x64xf32>,
      %94 = vector.extract_strided_slice %89 {offsets = [16, 0], sizes = [8, 64], strides = [1, 1]} : vector<128x64xf32> to vector<8x64xf32>
      %c0_78 = arith.constant 0 : index
      %c128 = arith.constant 128 : index
      %95 = vector.load %arg34[%c0_78, %c128] : memref<8x1024xf32, #tpu.memory_space<vmem>>, vector<8x64xf32>
      tpu.vector_store %arg34[%c0_78, %c128], %94 {strides = array<i32>} : memref<8x1024xf32, #tpu.memory_space<vmem>>, vector<8x64xf32>,
      %96 = vector.extract_strided_slice %89 {offsets = [24, 0], sizes = [8, 64], strides = [1, 1]} : vector<128x64xf32> to vector<8x64xf32>
      %c0_79 = arith.constant 0 : index
      %c192 = arith.constant 192 : index
      %97 = vector.load %arg34[%c0_79, %c192] : memref<8x1024xf32, #tpu.memory_space<vmem>>, vector<8x64xf32>
      tpu.vector_store %arg34[%c0_79, %c192], %96 {strides = array<i32>} : memref<8x1024xf32, #tpu.memory_space<vmem>>, vector<8x64xf32>,
      %98 = vector.extract_strided_slice %89 {offsets = [32, 0], sizes = [8, 64], strides = [1, 1]} : vector<128x64xf32> to vector<8x64xf32>
      %c0_80 = arith.constant 0 : index
      %c256 = arith.constant 256 : index
      %99 = vector.load %arg34[%c0_80, %c256] : memref<8x1024xf32, #tpu.memory_space<vmem>>, vector<8x64xf32>
      tpu.vector_store %arg34[%c0_80, %c256], %98 {strides = array<i32>} : memref<8x1024xf32, #tpu.memory_space<vmem>>, vector<8x64xf32>,
      %100 = vector.extract_strided_slice %89 {offsets = [40, 0], sizes = [8, 64], strides = [1, 1]} : vector<128x64xf32> to vector<8x64xf32>
      %c0_81 = arith.constant 0 : index
      %c320 = arith.constant 320 : index
      %101 = vector.load %arg34[%c0_81, %c320] : memref<8x1024xf32, #tpu.memory_space<vmem>>, vector<8x64xf32>
      tpu.vector_store %arg34[%c0_81, %c320], %100 {strides = array<i32>} : memref<8x1024xf32, #tpu.memory_space<vmem>>, vector<8x64xf32>,
      %102 = vector.extract_strided_slice %89 {offsets = [48, 0], sizes = [8, 64], strides = [1, 1]} : vector<128x64xf32> to vector<8x64xf32>
      %c0_82 = arith.constant 0 : index
      %c384 = arith.constant 384 : index
      %103 = vector.load %arg34[%c0_82, %c384] : memref<8x1024xf32, #tpu.memory_space<vmem>>, vector<8x64xf32>
      tpu.vector_store %arg34[%c0_82, %c384], %102 {strides = array<i32>} : memref<8x1024xf32, #tpu.memory_space<vmem>>, vector<8x64xf32>,
      %104 = vector.extract_strided_slice %89 {offsets = [56, 0], sizes = [8, 64], strides = [1, 1]} : vector<128x64xf32> to vector<8x64xf32>
      %c0_83 = arith.constant 0 : index
      %c448 = arith.constant 448 : index
      %105 = vector.load %arg34[%c0_83, %c448] : memref<8x1024xf32, #tpu.memory_space<vmem>>, vector<8x64xf32>
      tpu.vector_store %arg34[%c0_83, %c448], %104 {strides = array<i32>} : memref<8x1024xf32, #tpu.memory_space<vmem>>, vector<8x64xf32>,
      %106 = vector.extract_strided_slice %89 {offsets = [64, 0], sizes = [8, 64], strides = [1, 1]} : vector<128x64xf32> to vector<8x64xf32>
      %c0_84 = arith.constant 0 : index
      %c512 = arith.constant 512 : index
      %107 = vector.load %arg34[%c0_84, %c512] : memref<8x1024xf32, #tpu.memory_space<vmem>>, vector<8x64xf32>
      tpu.vector_store %arg34[%c0_84, %c512], %106 {strides = array<i32>} : memref<8x1024xf32, #tpu.memory_space<vmem>>, vector<8x64xf32>,
      %108 = vector.extract_strided_slice %89 {offsets = [72, 0], sizes = [8, 64], strides = [1, 1]} : vector<128x64xf32> to vector<8x64xf32>
      %c0_85 = arith.constant 0 : index
      %c576 = arith.constant 576 : index
      %109 = vector.load %arg34[%c0_85, %c576] : memref<8x1024xf32, #tpu.memory_space<vmem>>, vector<8x64xf32>
      tpu.vector_store %arg34[%c0_85, %c576], %108 {strides = array<i32>} : memref<8x1024xf32, #tpu.memory_space<vmem>>, vector<8x64xf32>,
      %110 = vector.extract_strided_slice %89 {offsets = [80, 0], sizes = [8, 64], strides = [1, 1]} : vector<128x64xf32> to vector<8x64xf32>
      %c0_86 = arith.constant 0 : index
      %c640 = arith.constant 640 : index
      %111 = vector.load %arg34[%c0_86, %c640] : memref<8x1024xf32, #tpu.memory_space<vmem>>, vector<8x64xf32>
      tpu.vector_store %arg34[%c0_86, %c640], %110 {strides = array<i32>} : memref<8x1024xf32, #tpu.memory_space<vmem>>, vector<8x64xf32>,
      %112 = vector.extract_strided_slice %89 {offsets = [88, 0], sizes = [8, 64], strides = [1, 1]} : vector<128x64xf32> to vector<8x64xf32>
      %c0_87 = arith.constant 0 : index
      %c704 = arith.constant 704 : index
      %113 = vector.load %arg34[%c0_87, %c704] : memref<8x1024xf32, #tpu.memory_space<vmem>>, vector<8x64xf32>
      tpu.vector_store %arg34[%c0_87, %c704], %112 {strides = array<i32>} : memref<8x1024xf32, #tpu.memory_space<vmem>>, vector<8x64xf32>,
      %114 = vector.extract_strided_slice %89 {offsets = [96, 0], sizes = [8, 64], strides = [1, 1]} : vector<128x64xf32> to vector<8x64xf32>
      %c0_88 = arith.constant 0 : index
      %c768 = arith.constant 768 : index
      %115 = vector.load %arg34[%c0_88, %c768] : memref<8x1024xf32, #tpu.memory_space<vmem>>, vector<8x64xf32>
      tpu.vector_store %arg34[%c0_88, %c768], %114 {strides = array<i32>} : memref<8x1024xf32, #tpu.memory_space<vmem>>, vector<8x64xf32>,
      %116 = vector.extract_strided_slice %89 {offsets = [104, 0], sizes = [8, 64], strides = [1, 1]} : vector<128x64xf32> to vector<8x64xf32>
      %c0_89 = arith.constant 0 : index
      %c832 = arith.constant 832 : index
      %117 = vector.load %arg34[%c0_89, %c832] : memref<8x1024xf32, #tpu.memory_space<vmem>>, vector<8x64xf32>
      tpu.vector_store %arg34[%c0_89, %c832], %116 {strides = array<i32>} : memref<8x1024xf32, #tpu.memory_space<vmem>>, vector<8x64xf32>,
      %118 = vector.extract_strided_slice %89 {offsets = [112, 0], sizes = [8, 64], strides = [1, 1]} : vector<128x64xf32> to vector<8x64xf32>
      %c0_90 = arith.constant 0 : index
      %c896 = arith.constant 896 : index
      %119 = vector.load %arg34[%c0_90, %c896] : memref<8x1024xf32, #tpu.memory_space<vmem>>, vector<8x64xf32>
      tpu.vector_store %arg34[%c0_90, %c896], %118 {strides = array<i32>} : memref<8x1024xf32, #tpu.memory_space<vmem>>, vector<8x64xf32>,
      %120 = vector.extract_strided_slice %89 {offsets = [120, 0], sizes = [8, 64], strides = [1, 1]} : vector<128x64xf32> to vector<8x64xf32>
      %c0_91 = arith.constant 0 : index
      %c960 = arith.constant 960 : index
      %121 = vector.load %arg34[%c0_91, %c960] : memref<8x1024xf32, #tpu.memory_space<vmem>>, vector<8x64xf32>
      tpu.vector_store %arg34[%c0_91, %c960], %120 {strides = array<i32>} : memref<8x1024xf32, #tpu.memory_space<vmem>>, vector<8x64xf32>,
      %c0_92 = arith.constant 0 : index
      %c0_93 = arith.constant 0 : index
      %122 = vector.load %arg34[%c0_92, %c0_93] : memref<8x1024xf32, #tpu.memory_space<vmem>>, vector<8x1024xf32>
      %123 = arith.truncf %122 : vector<8x1024xf32> to vector<8x1024xbf16>
      %c0_94 = arith.constant 0 : index
      %c0_95 = arith.constant 0 : index
      %124 = vector.load %arg22[%c0_94, %c0_95] : memref<1024x128xbf16, #tpu.memory_space<vmem>>, vector<1024x128xbf16>
      %cst_96 = arith.constant dense<0.000000e+00> : vector<8x128xf32>
      %125 = tpu.matmul %123, %124, %cst_96 {dimension_numbers = #tpu.dot_dimension_numbers<[1], [0], [0], [1], [0, 0, 1, 1], [], []>} : vector<8x1024xbf16>, vector<1024x128xbf16>, vector<8x128xf32> -> vector<8x128xf32>
      %c0_97 = arith.constant 0 : index
      %c0_98 = arith.constant 0 : index
      %126 = vector.load %arg23[%c0_97, %c0_98] : memref<1x128xf32, #tpu.memory_space<vmem>>, vector<1x128xf32>
      %127 = vector.broadcast %126 : vector<1x128xf32> to vector<8x128xf32>
      %128 = arith.mulf %125, %127 : vector<8x128xf32>
      %c0_99 = arith.constant 0 : index
      %c0_100 = arith.constant 0 : index
      %129 = vector.load %arg24[%c0_99, %c0_100] : memref<1x128xf32, #tpu.memory_space<vmem>>, vector<1x128xf32>
      %130 = vector.broadcast %129 : vector<1x128xf32> to vector<8x128xf32>
      %131 = arith.addf %128, %130 : vector<8x128xf32>
      %132 = math.tanh %131 : vector<8x128xf32>
      %c0_101 = arith.constant 0 : index
      %c0_102 = arith.constant 0 : index
      %133 = vector.load %arg35[%c0_101, %c0_102] : memref<8x128xf32, #tpu.memory_space<vmem>>, vector<8x128xf32>
      tpu.vector_store %arg35[%c0_101, %c0_102], %132 {strides = array<i32>} : memref<8x128xf32, #tpu.memory_space<vmem>>, vector<8x128xf32>,
    } else {
    }
    %c0 = arith.constant 0 : index
    %c0_1 = arith.constant 0 : index
    %3 = vector.load %arg25[%c0, %c0_1] : memref<8x8xf32, #tpu.memory_space<vmem>>, vector<8x8xf32>
    %c0_2 = arith.constant 0 : index
    %c0_3 = arith.constant 0 : index
    %4 = vector.load %arg35[%c0_2, %c0_3] : memref<8x128xf32, #tpu.memory_space<vmem>>, vector<8x128xf32>
    %cst = arith.constant dense<0.000000e+00> : vector<8x128xf32>
    %5 = tpu.matmul %3, %4, %cst {dimension_numbers = #tpu.dot_dimension_numbers<[1], [0], [0], [1], [0, 0, 1, 1], [], []>} : vector<8x8xf32>, vector<8x128xf32>, vector<8x128xf32> -> vector<8x128xf32>
    %c0_4 = arith.constant 0 : index
    %c0_5 = arith.constant 0 : index
    %6 = vector.load %arg26[%c0_4, %c0_5] : memref<8x128xf32, #tpu.memory_space<vmem>>, vector<8x128xf32>
    %7 = arith.mulf %5, %6 : vector<8x128xf32>
    %8 = arith.truncf %7 : vector<8x128xf32> to vector<8x128xbf16>
    %c0_6 = arith.constant 0 : index
    %c0_7 = arith.constant 0 : index
    %9 = vector.load %arg27[%c0_6, %c0_7] : memref<128x128xbf16, #tpu.memory_space<vmem>>, vector<128x128xbf16>
    %cst_8 = arith.constant dense<0.000000e+00> : vector<8x128xf32>
    %10 = tpu.matmul %8, %9, %cst_8 {dimension_numbers = #tpu.dot_dimension_numbers<[1], [0], [0], [1], [0, 0, 1, 1], [], []>} : vector<8x128xbf16>, vector<128x128xbf16>, vector<8x128xf32> -> vector<8x128xf32>
    %c0_9 = arith.constant 0 : index
    %c0_10 = arith.constant 0 : index
    %11 = vector.load %arg28[%c0_9, %c0_10] : memref<1x128xf32, #tpu.memory_space<vmem>>, vector<1x128xf32>
    %12 = vector.broadcast %11 : vector<1x128xf32> to vector<8x128xf32>
    %13 = arith.mulf %10, %12 : vector<8x128xf32>
    %c0_11 = arith.constant 0 : index
    %c0_12 = arith.constant 0 : index
    %14 = vector.load %arg29[%c0_11, %c0_12] : memref<1x128xf32, #tpu.memory_space<vmem>>, vector<1x128xf32>
    %15 = vector.broadcast %14 : vector<1x128xf32> to vector<8x128xf32>
    %16 = arith.addf %13, %15 : vector<8x128xf32>
    %17 = math.tanh %16 : vector<8x128xf32>
    %18 = arith.truncf %17 : vector<8x128xf32> to vector<8x128xbf16>
    %c0_13 = arith.constant 0 : index
    %c0_14 = arith.constant 0 : index
    %19 = vector.load %arg30[%c0_13, %c0_14] : memref<128x256xbf16, #tpu.memory_space<vmem>>, vector<128x256xbf16>
    %cst_15 = arith.constant dense<0.000000e+00> : vector<8x256xf32>
    %20 = tpu.matmul %18, %19, %cst_15 {dimension_numbers = #tpu.dot_dimension_numbers<[1], [0], [0], [1], [0, 0, 1, 1], [], []>} : vector<8x128xbf16>, vector<128x256xbf16>, vector<8x256xf32> -> vector<8x256xf32>
    %c0_16 = arith.constant 0 : index
    %c0_17 = arith.constant 0 : index
    %21 = vector.load %arg31[%c0_16, %c0_17] : memref<1x256xf32, #tpu.memory_space<vmem>>, vector<1x256xf32>
    %22 = vector.broadcast %21 : vector<1x256xf32> to vector<8x256xf32>
    %23 = arith.addf %20, %22 : vector<8x256xf32>
    %24 = vector.extract_strided_slice %23 {offsets = [0, 0], sizes = [8, 128], strides = [1, 1]} : vector<8x256xf32> to vector<8x128xf32>
    %25 = vector.extract_strided_slice %23 {offsets = [0, 128], sizes = [8, 128], strides = [1, 1]} : vector<8x256xf32> to vector<8x128xf32>
    %cst_18 = arith.constant 5.000000e-01 : f32
    %26 = vector.broadcast %cst_18 : f32 to vector<8x128xf32>
    %27 = arith.mulf %26, %25 : vector<8x128xf32>
    %28 = math.exp %27 : vector<8x128xf32>
    %c0_19 = arith.constant 0 : index
    %c0_20 = arith.constant 0 : index
    %29 = vector.load %arg32[%c0_19, %c0_20] : memref<8x128xf32, #tpu.memory_space<vmem>>, vector<8x128xf32>
    %30 = arith.mulf %28, %29 : vector<8x128xf32>
    %31 = arith.addf %24, %30 : vector<8x128xf32>
    %c0_21 = arith.constant 0 : index
    %c0_22 = arith.constant 0 : index
    %32 = vector.load %arg33[%c0_21, %c0_22] : memref<8x128xf32, #tpu.memory_space<vmem>>, vector<8x128xf32>
    tpu.vector_store %arg33[%c0_21, %c0_22], %31 {strides = array<i32>} : memref<8x128xf32, #tpu.memory_space<vmem>>, vector<8x128xf32>,
    return
  }
  func.func @transform_0(%arg0: i32) -> (i32, i32) {
    %c0_i32 = arith.constant 0 : i32
    %c0_i32_0 = arith.constant 0 : i32
    %c0_i32_1 = arith.constant 0 : i32
    return %c0_i32, %c0_i32_0 : i32, i32
  }
  func.func @transform_1(%arg0: i32) -> (i32, i32) {
    %c0_i32 = arith.constant 0 : i32
    %c0_i32_0 = arith.constant 0 : i32
    %c0_i32_1 = arith.constant 0 : i32
    return %c0_i32, %c0_i32_0 : i32, i32
  }
  func.func @transform_2(%arg0: i32) -> (i32, i32) {
    %c0_i32 = arith.constant 0 : i32
    %c0_i32_0 = arith.constant 0 : i32
    %c0_i32_1 = arith.constant 0 : i32
    return %c0_i32, %c0_i32_0 : i32, i32
  }
  func.func @transform_3(%arg0: i32) -> (i32, i32) {
    %c0_i32 = arith.constant 0 : i32
    %c0_i32_0 = arith.constant 0 : i32
    %c0_i32_1 = arith.constant 0 : i32
    return %c0_i32, %c0_i32_0 : i32, i32
  }
  func.func @transform_4(%arg0: i32) -> (i32, i32) {
    %c0_i32 = arith.constant 0 : i32
    %c0_i32_0 = arith.constant 0 : i32
    %c0_i32_1 = arith.constant 0 : i32
    return %c0_i32, %c0_i32_0 : i32, i32
  }
  func.func @transform_5(%arg0: i32) -> (i32, i32) {
    %c0_i32 = arith.constant 0 : i32
    %c0_i32_0 = arith.constant 0 : i32
    %c0_i32_1 = arith.constant 0 : i32
    return %c0_i32, %c0_i32_0 : i32, i32
  }
  func.func @transform_6(%arg0: i32) -> (i32, i32) {
    %c0_i32 = arith.constant 0 : i32
    %c0_i32_0 = arith.constant 0 : i32
    %c0_i32_1 = arith.constant 0 : i32
    return %c0_i32, %c0_i32_0 : i32, i32
  }
  func.func @transform_7(%arg0: i32) -> (i32, i32) {
    %c0_i32 = arith.constant 0 : i32
    %c0_i32_0 = arith.constant 0 : i32
    %c0_i32_1 = arith.constant 0 : i32
    return %c0_i32, %c0_i32_0 : i32, i32
  }
  func.func @transform_8(%arg0: i32) -> (i32, i32) {
    %c0_i32 = arith.constant 0 : i32
    %c0_i32_0 = arith.constant 0 : i32
    %c0_i32_1 = arith.constant 0 : i32
    return %c0_i32, %c0_i32_0 : i32, i32
  }
  func.func @transform_9(%arg0: i32) -> (i32, i32) {
    %c0_i32 = arith.constant 0 : i32
    %c0_i32_0 = arith.constant 0 : i32
    %c0_i32_1 = arith.constant 0 : i32
    return %c0_i32, %c0_i32_0 : i32, i32
  }
  func.func @transform_10(%arg0: i32) -> (i32, i32) {
    %c0_i32 = arith.constant 0 : i32
    %c0_i32_0 = arith.constant 0 : i32
    %c0_i32_1 = arith.constant 0 : i32
    return %c0_i32, %c0_i32_0 : i32, i32
  }
  func.func @transform_11(%arg0: i32) -> (i32, i32) {
    %c0_i32 = arith.constant 0 : i32
    %c0_i32_0 = arith.constant 0 : i32
    %c0_i32_1 = arith.constant 0 : i32
    return %c0_i32, %c0_i32_0 : i32, i32
  }
  func.func @transform_12(%arg0: i32) -> (i32, i32) {
    %c0_i32 = arith.constant 0 : i32
    %c0_i32_0 = arith.constant 0 : i32
    %c0_i32_1 = arith.constant 0 : i32
    return %c0_i32, %c0_i32_0 : i32, i32
  }
  func.func @transform_13(%arg0: i32) -> (i32, i32) {
    %c0_i32 = arith.constant 0 : i32
    %c0_i32_0 = arith.constant 0 : i32
    %c0_i32_1 = arith.constant 0 : i32
    return %c0_i32, %c0_i32_0 : i32, i32
  }
  func.func @transform_14(%arg0: i32) -> (i32, i32) {
    %c0_i32 = arith.constant 0 : i32
    %c0_i32_0 = arith.constant 0 : i32
    %c0_i32_1 = arith.constant 0 : i32
    return %c0_i32, %c0_i32_0 : i32, i32
  }
  func.func @transform_15(%arg0: i32) -> (i32, i32) {
    %c0_i32 = arith.constant 0 : i32
    %c0_i32_0 = arith.constant 0 : i32
    %c0_i32_1 = arith.constant 0 : i32
    return %c0_i32, %c0_i32_0 : i32, i32
  }
  func.func @transform_16(%arg0: i32) -> (i32, i32) {
    %c0_i32 = arith.constant 0 : i32
    %c0_i32_0 = arith.constant 0 : i32
    %c0_i32_1 = arith.constant 0 : i32
    return %c0_i32, %c0_i32_0 : i32, i32
  }
  func.func @transform_17(%arg0: i32) -> (i32, i32) {
    %c0_i32 = arith.constant 0 : i32
    %c0_i32_0 = arith.constant 0 : i32
    %c0_i32_1 = arith.constant 0 : i32
    return %c0_i32, %c0_i32_0 : i32, i32
  }
  func.func @transform_18(%arg0: i32) -> (i32, i32) {
    %c0_i32 = arith.constant 0 : i32
    %c0_i32_0 = arith.constant 0 : i32
    %c0_i32_1 = arith.constant 0 : i32
    return %c0_i32, %c0_i32_0 : i32, i32
  }
  func.func @transform_19(%arg0: i32) -> (i32, i32) {
    %c0_i32 = arith.constant 0 : i32
    %c0_i32_0 = arith.constant 0 : i32
    %c0_i32_1 = arith.constant 0 : i32
    return %c0_i32, %c0_i32_0 : i32, i32
  }
  func.func @transform_20(%arg0: i32) -> (i32, i32) {
    %c0_i32 = arith.constant 0 : i32
    %c0_i32_0 = arith.constant 0 : i32
    %c0_i32_1 = arith.constant 0 : i32
    return %c0_i32, %c0_i32_0 : i32, i32
  }
  func.func @transform_21(%arg0: i32) -> (i32, i32) {
    %c0_i32 = arith.constant 0 : i32
    %c0_i32_0 = arith.constant 0 : i32
    %c0_i32_1 = arith.constant 0 : i32
    return %c0_i32, %c0_i32_0 : i32, i32
  }
  func.func @transform_22(%arg0: i32) -> (i32, i32) {
    %c0_i32 = arith.constant 0 : i32
    %c0_i32_0 = arith.constant 0 : i32
    %c0_i32_1 = arith.constant 0 : i32
    return %c0_i32, %c0_i32_0 : i32, i32
  }
  func.func @transform_23(%arg0: i32) -> (i32, i32) {
    %c0_i32 = arith.constant 0 : i32
    %c0_i32_0 = arith.constant 0 : i32
    %c0_i32_1 = arith.constant 0 : i32
    return %c0_i32, %c0_i32_0 : i32, i32
  }
  func.func @transform_24(%arg0: i32) -> (i32, i32) {
    %c0_i32 = arith.constant 0 : i32
    %c0_i32_0 = arith.constant 0 : i32
    return %arg0, %c0_i32 : i32, i32
  }
  func.func @transform_25(%arg0: i32) -> (i32, i32) {
    %c0_i32 = arith.constant 0 : i32
    %c0_i32_0 = arith.constant 0 : i32
    return %arg0, %c0_i32 : i32, i32
  }
  func.func @transform_26(%arg0: i32) -> (i32, i32) {
    %c0_i32 = arith.constant 0 : i32
    %c0_i32_0 = arith.constant 0 : i32
    %c0_i32_1 = arith.constant 0 : i32
    return %c0_i32, %c0_i32_0 : i32, i32
  }
  func.func @transform_27(%arg0: i32) -> (i32, i32) {
    %c0_i32 = arith.constant 0 : i32
    %c0_i32_0 = arith.constant 0 : i32
    %c0_i32_1 = arith.constant 0 : i32
    return %c0_i32, %c0_i32_0 : i32, i32
  }
  func.func @transform_28(%arg0: i32) -> (i32, i32) {
    %c0_i32 = arith.constant 0 : i32
    %c0_i32_0 = arith.constant 0 : i32
    %c0_i32_1 = arith.constant 0 : i32
    return %c0_i32, %c0_i32_0 : i32, i32
  }
  func.func @transform_29(%arg0: i32) -> (i32, i32) {
    %c0_i32 = arith.constant 0 : i32
    %c0_i32_0 = arith.constant 0 : i32
    %c0_i32_1 = arith.constant 0 : i32
    return %c0_i32, %c0_i32_0 : i32, i32
  }
  func.func @transform_30(%arg0: i32) -> (i32, i32) {
    %c0_i32 = arith.constant 0 : i32
    %c0_i32_0 = arith.constant 0 : i32
    %c0_i32_1 = arith.constant 0 : i32
    return %c0_i32, %c0_i32_0 : i32, i32
  }
  func.func @transform_31(%arg0: i32) -> (i32, i32) {
    %c0_i32 = arith.constant 0 : i32
    %c0_i32_0 = arith.constant 0 : i32
    return %arg0, %c0_i32 : i32, i32
  }
  func.func @transform_32(%arg0: i32) -> (i32, i32) {
    %c0_i32 = arith.constant 0 : i32
    %c0_i32_0 = arith.constant 0 : i32
    return %arg0, %c0_i32 : i32, i32
  }
}

</mosaic_0001>

<bundles_post_ra>
// kernel: diverse_sampling_forward.1
= control target key start
LH: loop header
LB: loop body
LE: loop exit
PB: predicated region body
PF: predicated region fallthrough
CT: control target
= control target key end

     0   :  { %vm227_vm0 = vcmask 1046528   ;;  %s4498_s3 = smov 1   ;;  %vm228_vm1 = vcmask 1047552   ;;  %v4499_v0 = vmov 65535   ;;  %vm202_vm2 = vcmask 121856   ;;  %s4500_s10 = smov 2   ;;  %s5192_s0 = inlined_call_operand.smem [shape: u32[33], index: -1, kind: input, shape index: {}] }
   0x1   :  { %s3369_s6 = sld [smem:[%s5192_s0 + %s4498_s3]]   ;;  %v229_v1 = vsel %vm227_vm0, 4294967295, %v4499_v0  ;;  %s4501_s14 = smov 5   ;;  %vm620_vm3 = vcmask 523264   ;;  %vm2258_vm4 = vcmask 1048064   ;;  %vm4522_vm5 = vmmov 0  }
   0x2   :  { %s1_s9 = sld [smem:[%s5192_s0]]   ;;  %v230_v2 = vsel %vm228_vm1, %v229_v1, 0  ;;  %s4502_s18 = smov 3   ;;  %vm3010_vm6 = vcmask 64512  }
   0x3   :  { %s4557_s13 = sld [smem:[%s5192_s0 + %s4500_s10]]   ;;  %s4503_s22 = smov 4  }
   0x4   :  { %s4563_s17 = sld [smem:[%s5192_s0 + %s4501_s14]]   ;;  %s4504_s26 = smov 6  }
   0x5   :  { %s4579_s21 = sld [smem:[%s5192_s0 + %s4502_s18]]   ;;  %s4505_s30 = smov 9  }
   0x6   :  { %s4584_s25 = sld [smem:[%s5192_s0 + %s4503_s22]]   ;;  %s4506_s4 = smov 7  }
   0x7   :  { %v4171_v3 = vld [vmem:[%s3369_s6] sm:$0xff]   ;;  %s4677_s29 = sld [smem:[%s5192_s0 + %s4504_s26]]   ;;  %s4507_s8 = smov 8  }
   0x8   :  { %v4172_v4 = vld [vmem:[%s1_s9] sm:$0xff]   ;;  %v232_v5 = vand.u32 %v4171_v3, %v230_v2  ;;  %v4173_v6 = vld [vmem:[%s1_s9 + $0x8] sm:$0xff]   ;;  %v4174_v7 = vld [vmem:[%s1_s9 + $0x10] sm:$0xff]   ;;  %s4683_s3 = sld [smem:[%s5192_s0 + %s4505_s30]]   ;;  %s4508_s12 = smov 10  }
   0x9   :  { %3837 = vmatprep.mubr.msk.bf16.mxu0 %vm202_vm2, %v4172_v4  ;;  %v4175_v8 = vld [vmem:[%s1_s9 + $0x18] sm:$0xff]   ;;  %v4176_v9 = vld [vmem:[%s1_s9 + $0x20] sm:$0xff]   ;;  %v4177_v10 = vld [vmem:[%s1_s9 + $0x28] sm:$0xff]   ;;  %s4699_s7 = sld [smem:[%s5192_s0 + %s4506_s4]]   ;;  %s4509_s16 = smov 13  }
   0xa   :  { %3835 = vmatprep.subr.bf16.mxu0 %v232_v5  ;;  %v4178_v11 = vld [vmem:[%s1_s9 + $0x30] sm:$0xff]   ;;  %v4179_v12 = vld [vmem:[%s1_s9 + $0x38] sm:$0xff]   ;;  %v4180_v13 = vld [vmem:[%s4557_s13] sm:$0xff]   ;;  %s4704_s11 = sld [smem:[%s5192_s0 + %s4507_s8]]   ;;  %s4510_s20 = smov 11  }
   0xb   :  { %3836 = vmatpush3.bf16.msra.mxu0 %v232_v5  ;;  %3869 = vmatprep.mubr.bf16.mxu1 %v4180_v13  ;;  %v4188_v14 = vld [vmem:[%s4563_s17] sm:$0xff]   ;;  %v4181_v39 = vld [vmem:[%s4557_s13 + $0x8] sm:$0xff]   ;;  %v4182_v40 = vld [vmem:[%s4557_s13 + $0x10] sm:$0xff]   ;;  %s4749_s15 = sld [smem:[%s5192_s0 + %s4508_s12]]   ;;  %s4511_s24 = smov 12  }
   0xc   :  { %3885 = vmatprep.subr.bf16.mxu0 %v4188_v14  ;;  %v4183_v41 = vld [vmem:[%s4557_s13 + $0x18] sm:$0xff]   ;;  %v4184_v42 = vld [vmem:[%s4557_s13 + $0x20] sm:$0xff]   ;;  %v4185_v43 = vld [vmem:[%s4557_s13 + $0x28] sm:$0xff]   ;;  %s4755_s19 = sld [smem:[%s5192_s0 + %s4509_s16]]   ;;  %s4512_s28 = smov 14  }
   0xd   :  { %v4186_v44 = vld [vmem:[%s4557_s13 + $0x30] sm:$0xff]   ;;  %v4187_v45 = vld [vmem:[%s4557_s13 + $0x38] sm:$0xff]   ;;  %v4189_v46 = vld [vmem:[%s4563_s17 + $0x8] sm:$0xff]   ;;  %s4771_s23 = sld [smem:[%s5192_s0 + %s4510_s20]]   ;;  %s4513_s2 = smov 17  }
   0xe   :  { %3838 = vmatmul.mubr.msk.bf16.vlgmr.msra.gmra.mrb[0].mxu0 %vm202_vm2, %v4173_v6  ;;  %v4190_v47 = vld [vmem:[%s4563_s17 + $0x10] sm:$0xff]   ;;  %v4191_v48 = vld [vmem:[%s4563_s17 + $0x18] sm:$0xff]   ;;  %v500_v50 = vld [vmem:[%s4579_s21] sm:$0xff]  ;;  %s4776_s27 = sld [smem:[%s5192_s0 + %s4511_s24]]   ;;  %s4514_s6 = smov 15  }
   0xf   :  { %3841 = vmatprep.mubr.msk.bf16.mxu0 %vm202_vm2, %v4174_v7  ;;  %3886 = vmatpush3.bf16.msra.mxu0 %v4188_v14  ;;  %v502_v49 = vld [vmem:[%s4579_s21 + $0x10] sm:$0xff]  ;;  %v503_v52 = vld [vmem:[%s4579_s21 + $0x18] sm:$0xff]  ;;  %v532_v55 = vld [vmem:[%s4584_s25] sm:$0xff]  ;;  %s4885_s1 = sld [smem:[%s5192_s0 + %s4512_s28]]   ;;  %s4515_s10 = smov 16  }
  0x10   :  { %3887 = vmatprep.subr.bf16.mxu0 %v4189_v46  ;;  %v501_v56 = vld [vmem:[%s4579_s21 + $0x8] sm:$0xff]  ;;  %v534_v57 = vld [vmem:[%s4584_s25 + $0x10] sm:$0xff]  ;;  %v535_v60 = vld [vmem:[%s4584_s25 + $0x18] sm:$0xff]  ;;  %s4891_s5 = sld [smem:[%s5192_s0 + %s4513_s2]]   ;;  %s4516_s14 = smov 18  }
  0x11   :  { %v533_v63 = vld [vmem:[%s4584_s25 + $0x8] sm:$0xff]  ;;  %v506_v5 = vld [vmem:[%s4579_s21 + $0x30] sm:$0xff]  ;;  %v504_v6 = vld [vmem:[%s4579_s21 + $0x20] sm:$0xff]  ;;  %s4907_s9 = sld [smem:[%s5192_s0 + %s4514_s6]]   ;;  %s4517_s18 = smov 21  }
  0x12   :  { %v538_v13 = vld [vmem:[%s4584_s25 + $0x30] sm:$0xff]  ;;  %s4912_s13 = sld [smem:[%s5192_s0 + %s4515_s10]]   ;;  %s4518_s22 = smov 19  }
  0x13   :  { %3888 = vmatpush3.bf16.msra.mxu0 %v4189_v46  ;;  %s4957_s17 = sld [smem:[%s5192_s0 + %s4516_s14]]   ;;  %s4519_s26 = smov 20  }
  0x14   :  { %3889 = vmatprep.subr.bf16.mxu0 %v4190_v47  ;;  %s4520_s30 = smov 64  }
  0x16   :  { %3842 = vmatmul.mubr.msk.bf16.gmra.mrb[4].mxu0 %vm202_vm2, %v4175_v8  ;;  %v507_v8 = vld [vmem:[%s4579_s21 + $0x38] sm:$0xff] }
  0x17   :  { %3845 = vmatprep.mubr.msk.bf16.mxu0 %vm202_vm2, %v4176_v9  ;;  %3890 = vmatpush3.bf16.msra.mxu0 %v4190_v47 }
  0x18   :  { %3891 = vmatprep.subr.bf16.mxu0 %v4191_v48 }
  0x1b   :  { %3892 = vmatpush3.bf16.msra.mxu0 %v4191_v48 }
  0x1e   :  { %3846 = vmatmul.mubr.msk.bf16.gmra.mrb[8].mxu0 %vm202_vm2, %v4177_v10 }
  0x1f   :  { %3849 = vmatprep.mubr.msk.bf16.mxu0 %vm202_vm2, %v4178_v11  ;;  %v536_v11 = vld [vmem:[%s4584_s25 + $0x20] sm:$0xff] }
  0x26   :  { %3850 = vmatmul.mubr.msk.bf16.gmra.mrb[12].mxu0 %vm202_vm2, %v4179_v12  ;;  %v505_v12 = vld [vmem:[%s4579_s21 + $0x28] sm:$0xff] }
  0xe1   :  { %v3839_v15 = vpop.f32.mrb[0].mxu0 }
  0xe2   :  { %v268_v16 = vpop.f32.mrb[1].mxu0 }
  0xe3   :  { %v3840_v17 = vpop.f32.mrb[2].mxu0 }
  0xe4   :  { %v348_v18 = vpack.c.bf16 %v3840_v17, %v3839_v15  ;;  %v271_v19 = vpop.f32.mrb[3].mxu0 }
  0xe5   :  { %v347_v20 = vpack.c.bf16 %v271_v19, %v268_v16  ;;  %v539_v16 = vld [vmem:[%s4584_s25 + $0x38] sm:$0xff]  ;;  %v537_v19 = vld [vmem:[%s4584_s25 + $0x28] sm:$0xff] }
  0xe7   :  { %3853 = vmatprep.subr.bf16.mxu1 %v347_v20 }
  0xe8   :  { %3854 = vmatpush3.bf16.msra.mxu1 %v347_v20 }
  0xe9   :  { %v3843_v21 = vpop.f32.mrb[4].mxu0  ;;  %3855 = vmatprep.subr.bf16.mxu1 %v348_v18 }
  0xea   :  { %v284_v22 = vpop.f32.mrb[5].mxu0 }
  0xeb   :  { %v3844_v23 = vpop.f32.mrb[6].mxu0 }
  0xec   :  { %v350_v24 = vpack.c.bf16 %v3844_v23, %v3843_v21  ;;  %v287_v25 = vpop.f32.mrb[7].mxu0  ;;  %3856 = vmatpush3.bf16.msra.mxu1 %v348_v18 }
  0xed   :  { %v349_v26 = vpack.c.bf16 %v287_v25, %v284_v22  ;;  %v510_v25 = vld [vmem:[%s4579_s21 + $0x50] sm:$0xff] }
  0xef   :  { %3857 = vmatprep.subr.bf16.mxu1 %v349_v26 }
  0xf0   :  { %3858 = vmatpush3.bf16.msra.mxu1 %v349_v26  ;;  %v508_v26 = vld [vmem:[%s4579_s21 + $0x40] sm:$0xff] }
  0xf1   :  { %v3847_v27 = vpop.f32.mrb[8].mxu0  ;;  %3859 = vmatprep.subr.bf16.mxu1 %v350_v24 }
  0xf2   :  { %v300_v28 = vpop.f32.mrb[9].mxu0 }
  0xf3   :  { %v3848_v29 = vpop.f32.mrb[10].mxu0 }
  0xf4   :  { %v352_v30 = vpack.c.bf16 %v3848_v29, %v3847_v27  ;;  %v303_v31 = vpop.f32.mrb[11].mxu0  ;;  %3860 = vmatpush3.bf16.msra.mxu1 %v350_v24  ;;  %v511_v29 = vld [vmem:[%s4579_s21 + $0x58] sm:$0xff] }
  0xf5   :  { %v351_v32 = vpack.c.bf16 %v303_v31, %v300_v28 }
  0xf7   :  { %3861 = vmatprep.subr.bf16.mxu1 %v351_v32 }
  0xf8   :  { %3862 = vmatpush3.bf16.msra.mxu1 %v351_v32 }
  0xf9   :  { %v3851_v33 = vpop.f32.mrb[12].mxu0  ;;  %3863 = vmatprep.subr.bf16.mxu1 %v352_v30 }
  0xfa   :  { %v316_v34 = vpop.f32.mrb[13].mxu0 }
  0xfb   :  { %v3852_v35 = vpop.f32.mrb[14].mxu0 }
  0xfc   :  { %v354_v36 = vpack.c.bf16 %v3852_v35, %v3851_v33  ;;  %v319_v37 = vpop.f32.mrb[15].mxu0  ;;  %3864 = vmatpush3.bf16.msra.mxu1 %v352_v30  ;;  %v540_v33 = vld [vmem:[%s4584_s25 + $0x40] sm:$0xff] }
  0xfd   :  { %v353_v38 = vpack.c.bf16 %v319_v37, %v316_v34  ;;  %v509_v34 = vld [vmem:[%s4579_s21 + $0x48] sm:$0xff] }
  0xff   :  { %3865 = vmatprep.subr.bf16.mxu1 %v353_v38 }
 0x100   :  { %3866 = vmatpush3.bf16.msra.mxu1 %v353_v38 }
 0x101   :  { %3867 = vmatprep.subr.bf16.mxu1 %v354_v36 }
 0x104   :  { %3868 = vmatpush3.bf16.msra.mxu1 %v354_v36  ;;  %v542_v36 = vld [vmem:[%s4584_s25 + $0x50] sm:$0xff] }
 0x107   :  { %3870 = vmatmul.mubr.bf16.vlgmr.msra.gmra.mrb[0].mxu1 %v4181_v39  ;;  %v543_v39 = vld [vmem:[%s4584_s25 + $0x58] sm:$0xff] }
 0x108   :  { %3873 = vmatprep.mubr.bf16.mxu1 %v4182_v40 }
 0x10f   :  { %3874 = vmatmul.mubr.bf16.gmra.mrb[4].mxu1 %v4183_v41 }
 0x110   :  { %3877 = vmatprep.mubr.bf16.mxu1 %v4184_v42 }
 0x117   :  { %3878 = vmatmul.mubr.bf16.gmra.mrb[8].mxu1 %v4185_v43  ;;  %v541_v43 = vld [vmem:[%s4584_s25 + $0x48] sm:$0xff] }
 0x118   :  { %3881 = vmatprep.mubr.bf16.mxu1 %v4186_v44 }
 0x11f   :  { %3882 = vmatmul.mubr.bf16.gmra.mrb[12].mxu1 %v4187_v45 }
 0x1da   :  { %v3871_v51 = vpop.f32.mrb[0].mxu1 }
 0x1db   :  { %v518_v53 = vmul.f32 %v3871_v51, %v502_v49  ;;  %v437_v54 = vpop.f32.mrb[1].mxu1  ;;  %v514_v51 = vld [vmem:[%s4579_s21 + $0x70] sm:$0xff] }
 0x1dc   :  { %v516_v58 = vmul.f32 %v500_v50, %v437_v54  ;;  %v3872_v59 = vpop.f32.mrb[2].mxu1 }
 0x1dd   :  { %v519_v61 = vmul.f32 %v3872_v59, %v503_v52  ;;  %v440_v62 = vpop.f32.mrb[3].mxu1  ;;  %v550_v2 = vadd.f32 %v534_v57, %v518_v53  ;;  %v512_v52 = vld [vmem:[%s4579_s21 + $0x60] sm:$0xff] }
 0x1de   :  { %v548_v0 = vadd.f32 %v532_v55, %v516_v58  ;;  %v517_v1 = vmul.f32 %v501_v56, %v440_v62  ;;  %v515_v55 = vld [vmem:[%s4579_s21 + $0x78] sm:$0xff]  ;;  %v544_v59 = vld [vmem:[%s4584_s25 + $0x60] sm:$0xff]  ;;  %v546_v62 = vld [vmem:[%s4584_s25 + $0x70] sm:$0xff] }
 0x1df   :  { %v551_v3 = vadd.f32 %v535_v60, %v519_v61  ;;  %v513_v60 = vld [vmem:[%s4579_s21 + $0x68] sm:$0xff]  ;;  %s4970_s21 = sld [smem:[%s5192_s0 + %s4517_s18]]  }
 0x1e0   :  { %4332 = vtanh.f32 %v548_v0  ;;  %v549_v4 = vadd.f32 %v533_v63, %v517_v1  ;;  %v547_v1 = vld [vmem:[%s4584_s25 + $0x78] sm:$0xff] }
 0x1e1   :  { %4334 = vtanh.f32 %v551_v3 }
 0x1e2   :  { %4336 = vtanh.f32 %v549_v4  ;;  %v3875_v7 = vpop.f32.mrb[4].mxu1 }
 0x1e3   :  { %4338 = vtanh.f32 %v550_v2  ;;  %v522_v9 = vmul.f32 %v3875_v7, %v506_v5  ;;  %v453_v10 = vpop.f32.mrb[5].mxu1  ;;  %v545_v5 = vld [vmem:[%s4584_s25 + $0x68] sm:$0xff]  ;;  %s4991_s25 = sld [smem:[%s5192_s0 + %s4518_s22]]  }
 0x1e4   :  { %v520_v14 = vmul.f32 %v504_v6, %v453_v10  ;;  %v3876_v15 = vpop.f32.mrb[6].mxu1 }
 0x1e5   :  { %v523_v17 = vmul.f32 %v3876_v15, %v507_v8  ;;  %v456_v18 = vpop.f32.mrb[7].mxu1  ;;  %v554_v22 = vadd.f32 %v538_v13, %v522_v9 }
 0x1e6   :  { %v552_v20 = vadd.f32 %v536_v11, %v520_v14  ;;  %v521_v21 = vmul.f32 %v505_v12, %v456_v18 }
 0x1e7   :  { %v555_v23 = vadd.f32 %v539_v16, %v523_v17 }
 0x1e8   :  { %4340 = vtanh.f32 %v552_v20  ;;  %v553_v24 = vadd.f32 %v537_v19, %v521_v21 }
 0x1e9   :  { %4342 = vtanh.f32 %v555_v23 }
 0x1ea   :  { %v4604_v27 = vpop.eup %4332  ;;  %4344 = vtanh.f32 %v553_v24  ;;  %v3879_v28 = vpop.f32.mrb[8].mxu1 }
 0x1eb   :  { %v4607_v30 = vpop.eup %4334  ;;  %4346 = vtanh.f32 %v554_v22  ;;  %v526_v31 = vmul.f32 %v3879_v28, %v510_v25  ;;  %v469_v32 = vpop.f32.mrb[9].mxu1  ;;  %v4192_v25 = vld [vmem:[%s4677_s29] sm:$0xff]  }
 0x1ec   :  { %v4611_v35 = vpop.eup %4336  ;;  %v524_v37 = vmul.f32 %v508_v26, %v469_v32  ;;  %v3880_v38 = vpop.f32.mrb[10].mxu1  ;;  %3925 = vmatprep.mubr.bf16.mxu1 %v4192_v25  ;;  %v4200_v26 = vld [vmem:[%s4683_s3] sm:$0xff]  }
 0x1ed   :  { %v4615_v40 = vpop.eup %4338  ;;  %v527_v41 = vmul.f32 %v3880_v38, %v511_v29  ;;  %v472_v42 = vpop.f32.mrb[11].mxu1  ;;  %v580_v44 = vpack.c.bf16 %v4611_v35, %v4604_v27  ;;  %v558_v48 = vadd.f32 %v542_v36, %v526_v31  ;;  %3941 = vmatprep.subr.bf16.mxu0 %v4200_v26 }
 0x1ee   :  { %v581_v45 = vpack.c.bf16 %v4607_v30, %v4615_v40  ;;  %v556_v46 = vadd.f32 %v540_v33, %v524_v37  ;;  %v525_v47 = vmul.f32 %v509_v34, %v472_v42 }
 0x1ef   :  { %v559_v49 = vadd.f32 %v543_v39, %v527_v41  ;;  %3893 = vmatprep.mubr.msk.bf16.mxu0 %vm620_vm3, %v580_v44 }
 0x1f0   :  { %4348 = vtanh.f32 %v556_v46  ;;  %v557_v50 = vadd.f32 %v541_v43, %v525_v47  ;;  %3894 = vmatmul.mubr.msk.bf16.vlgmr.msra.gmra.mrb[16].mxu0 %vm620_vm3, %v581_v45 }
 0x1f1   :  { %4350 = vtanh.f32 %v559_v49  ;;  %3942 = vmatpush3.bf16.msra.mxu0 %v4200_v26 }
 0x1f2   :  { %v4626_v53 = vpop.eup %4340  ;;  %4352 = vtanh.f32 %v557_v50  ;;  %v3883_v54 = vpop.f32.mrb[12].mxu1 }
 0x1f3   :  { %v4629_v56 = vpop.eup %4342  ;;  %4354 = vtanh.f32 %v558_v48  ;;  %v530_v57 = vmul.f32 %v3883_v54, %v514_v51  ;;  %v485_v58 = vpop.f32.mrb[13].mxu1 }
 0x1f4   :  { %v4633_v61 = vpop.eup %4344  ;;  %v528_v63 = vmul.f32 %v512_v52, %v485_v58  ;;  %v3884_v0 = vpop.f32.mrb[14].mxu1  ;;  %v4194_v58 = vld [vmem:[%s4677_s29 + $0x10] sm:$0xff]  }
 0x1f5   :  { %v4637_v2 = vpop.eup %4346  ;;  %v531_v3 = vmul.f32 %v3884_v0, %v515_v55  ;;  %v488_v4 = vpop.f32.mrb[15].mxu1  ;;  %v582_v6 = vpack.c.bf16 %v4633_v61, %v4626_v53  ;;  %v562_v10 = vadd.f32 %v546_v62, %v530_v57  ;;  %v4193_v57 = vld [vmem:[%s4677_s29 + $0x8] sm:$0xff]   ;;  %v4199_v0 = vld [vmem:[%s4677_s29 + $0x38] sm:$0xff]  }
 0x1f6   :  { %v560_v7 = vadd.f32 %v544_v59, %v528_v63  ;;  %v529_v8 = vmul.f32 %v513_v60, %v488_v4  ;;  %v583_v9 = vpack.c.bf16 %v4629_v56, %v4637_v2  ;;  %v4195_v59 = vld [vmem:[%s4677_s29 + $0x18] sm:$0xff]   ;;  %v4196_v60 = vld [vmem:[%s4677_s29 + $0x20] sm:$0xff]   ;;  %v4197_v62 = vld [vmem:[%s4677_s29 + $0x28] sm:$0xff]  }
 0x1f7   :  { %v563_v11 = vadd.f32 %v547_v1, %v531_v3  ;;  %3897 = vmatprep.mubr.msk.bf16.mxu0 %vm620_vm3, %v582_v6  ;;  %v4198_v63 = vld [vmem:[%s4677_s29 + $0x30] sm:$0xff]   ;;  %v4201_v1 = vld [vmem:[%s4683_s3 + $0x8] sm:$0xff]   ;;  %v4203_v4 = vld [vmem:[%s4683_s3 + $0x18] sm:$0xff]   ;;  %s4996_s29 = sld [smem:[%s5192_s0 + %s4519_s26]]  }
 0x1f8   :  { %4356 = vtanh.f32 %v560_v7  ;;  %v561_v12 = vadd.f32 %v545_v5, %v529_v8  ;;  %3898 = vmatmul.mubr.msk.bf16.gmra.mrb[20].mxu0 %vm620_vm3, %v583_v9  ;;  %3943 = vmatprep.subr.bf16.mxu0 %v4201_v1  ;;  %v4202_v3 = vld [vmem:[%s4683_s3 + $0x10] sm:$0xff]   ;;  %v911_v6 = vld [vmem:[%s4699_s7] sm:$0xff]  ;;  %v914_v9 = vld [vmem:[%s4699_s7 + $0x18] sm:$0xff]  ;;  %s4532_s3 = smov 30  }
 0x1f9   :  { %4358 = vtanh.f32 %v563_v11  ;;  %3944 = vmatpush3.bf16.msra.mxu0 %v4201_v1  ;;  %v913_v5 = vld [vmem:[%s4699_s7 + $0x10] sm:$0xff]  ;;  %s3398_s6 = sld [smem:[%s5192_s0 + %s4532_s3]]  }
 0x1fa   :  { %v4646_v13 = vpop.eup %4348  ;;  %4360 = vtanh.f32 %v561_v12  ;;  %3945 = vmatprep.subr.bf16.mxu0 %v4202_v3  ;;  %v945_v8 = vld [vmem:[%s4704_s11 + $0x10] sm:$0xff]  ;;  %v943_v12 = vld [vmem:[%s4704_s11] sm:$0xff] }
 0x1fb   :  { %v4648_v14 = vpop.eup %4350  ;;  %4362 = vtanh.f32 %v562_v10  ;;  %v953_v1 = vld [vmem:[%s4704_s11 + $0x50] sm:$0xff] }
 0x1fc   :  { %v4650_v15 = vpop.eup %4352 }
 0x1fd   :  { %v4652_v16 = vpop.eup %4354  ;;  %v584_v17 = vpack.c.bf16 %v4650_v15, %v4646_v13  ;;  %3946 = vmatpush3.bf16.msra.mxu0 %v4202_v3  ;;  %v922_v3 = vld [vmem:[%s4699_s7 + $0x58] sm:$0xff] }
 0x1fe   :  { %v585_v18 = vpack.c.bf16 %v4648_v14, %v4652_v16  ;;  %3947 = vmatprep.subr.bf16.mxu0 %v4203_v4 }
 0x1ff   :  { %3901 = vmatprep.mubr.msk.bf16.mxu0 %vm620_vm3, %v584_v17  ;;  %v912_v17 = vld [vmem:[%s4699_s7 + $0x8] sm:$0xff] }
 0x200   :  { %3902 = vmatmul.mubr.msk.bf16.gmra.mrb[24].mxu0 %vm620_vm3, %v585_v18 }
 0x201   :  { %3948 = vmatpush3.bf16.msra.mxu0 %v4203_v4 }
 0x202   :  { %v4660_v19 = vpop.eup %4356 }
 0x203   :  { %v4662_v20 = vpop.eup %4358 }
 0x204   :  { %v4664_v21 = vpop.eup %4360 }
 0x205   :  { %v4666_v22 = vpop.eup %4362  ;;  %v586_v23 = vpack.c.bf16 %v4664_v21, %v4660_v19 }
 0x206   :  { %v587_v24 = vpack.c.bf16 %v4662_v20, %v4666_v22 }
 0x207   :  { %3905 = vmatprep.mubr.msk.bf16.mxu0 %vm620_vm3, %v586_v23 }
 0x208   :  { %3906 = vmatmul.mubr.msk.bf16.gmra.mrb[28].mxu0 %vm620_vm3, %v587_v24  ;;  %v946_v24 = vld [vmem:[%s4704_s11 + $0x18] sm:$0xff] }
 0x2c3   :  { %v3895_v28 = vpop.f32.mrb[16].mxu0 }
 0x2c4   :  { %v679_v29 = vpop.f32.mrb[17].mxu0 }
 0x2c5   :  { %v3896_v31 = vpop.f32.mrb[18].mxu0 }
 0x2c6   :  { %v759_v32 = vpack.c.bf16 %v3896_v31, %v3895_v28  ;;  %v682_v33 = vpop.f32.mrb[19].mxu0 }
 0x2c7   :  { %v758_v34 = vpack.c.bf16 %v682_v33, %v679_v29  ;;  %v944_v29 = vld [vmem:[%s4704_s11 + $0x8] sm:$0xff] }
 0x2c9   :  { %3909 = vmatprep.subr.bf16.mxu1 %v758_v34 }
 0x2ca   :  { %3910 = vmatpush3.bf16.msra.mxu1 %v758_v34 }
 0x2cb   :  { %v3899_v36 = vpop.f32.mrb[20].mxu0  ;;  %3911 = vmatprep.subr.bf16.mxu1 %v759_v32 }
 0x2cc   :  { %v695_v37 = vpop.f32.mrb[21].mxu0 }
 0x2cd   :  { %v3900_v38 = vpop.f32.mrb[22].mxu0 }
 0x2ce   :  { %v761_v39 = vpack.c.bf16 %v3900_v38, %v3899_v36  ;;  %v698_v41 = vpop.f32.mrb[23].mxu0  ;;  %3912 = vmatpush3.bf16.msra.mxu1 %v759_v32  ;;  %v917_v36 = vld [vmem:[%s4699_s7 + $0x30] sm:$0xff] }
 0x2cf   :  { %v760_v42 = vpack.c.bf16 %v698_v41, %v695_v37  ;;  %v915_v37 = vld [vmem:[%s4699_s7 + $0x20] sm:$0xff]  ;;  %v918_v41 = vld [vmem:[%s4699_s7 + $0x38] sm:$0xff] }
 0x2d1   :  { %3913 = vmatprep.subr.bf16.mxu1 %v760_v42 }
 0x2d2   :  { %3914 = vmatpush3.bf16.msra.mxu1 %v760_v42 }
 0x2d3   :  { %v3903_v43 = vpop.f32.mrb[24].mxu0  ;;  %3915 = vmatprep.subr.bf16.mxu1 %v761_v39 }
 0x2d4   :  { %v711_v44 = vpop.f32.mrb[25].mxu0 }
 0x2d5   :  { %v3904_v45 = vpop.f32.mrb[26].mxu0 }
 0x2d6   :  { %v763_v46 = vpack.c.bf16 %v3904_v45, %v3903_v43  ;;  %v714_v47 = vpop.f32.mrb[27].mxu0  ;;  %3916 = vmatpush3.bf16.msra.mxu1 %v761_v39  ;;  %v949_v39 = vld [vmem:[%s4704_s11 + $0x30] sm:$0xff]  ;;  %v916_v45 = vld [vmem:[%s4699_s7 + $0x28] sm:$0xff] }
 0x2d7   :  { %v762_v48 = vpack.c.bf16 %v714_v47, %v711_v44  ;;  %v947_v44 = vld [vmem:[%s4704_s11 + $0x20] sm:$0xff] }
 0x2d9   :  { %3917 = vmatprep.subr.bf16.mxu1 %v762_v48 }
 0x2da   :  { %3918 = vmatpush3.bf16.msra.mxu1 %v762_v48  ;;  %v950_v48 = vld [vmem:[%s4704_s11 + $0x38] sm:$0xff] }
 0x2db   :  { %v3907_v49 = vpop.f32.mrb[28].mxu0  ;;  %3919 = vmatprep.subr.bf16.mxu1 %v763_v46 }
 0x2dc   :  { %v727_v50 = vpop.f32.mrb[29].mxu0 }
 0x2dd   :  { %v3908_v51 = vpop.f32.mrb[30].mxu0 }
 0x2de   :  { %v765_v52 = vpack.c.bf16 %v3908_v51, %v3907_v49  ;;  %v730_v54 = vpop.f32.mrb[31].mxu0  ;;  %3920 = vmatpush3.bf16.msra.mxu1 %v763_v46 }
 0x2df   :  { %v764_v55 = vpack.c.bf16 %v730_v54, %v727_v50 }
 0x2e1   :  { %3921 = vmatprep.subr.bf16.mxu1 %v764_v55 }
 0x2e2   :  { %3922 = vmatpush3.bf16.msra.mxu1 %v764_v55 }
 0x2e3   :  { %3923 = vmatprep.subr.bf16.mxu1 %v765_v52 }
 0x2e6   :  { %3924 = vmatpush3.bf16.msra.mxu1 %v765_v52  ;;  %v948_v52 = vld [vmem:[%s4704_s11 + $0x28] sm:$0xff] }
 0x2e9   :  { %3926 = vmatmul.mubr.bf16.vlgmr.msra.gmra.mrb[16].mxu1 %v4193_v57 }
 0x2ea   :  { %3929 = vmatprep.mubr.bf16.mxu1 %v4194_v58 }
 0x2f1   :  { %3930 = vmatmul.mubr.bf16.gmra.mrb[20].mxu1 %v4195_v59  ;;  %v921_v59 = vld [vmem:[%s4699_s7 + $0x50] sm:$0xff] }
 0x2f2   :  { %3933 = vmatprep.mubr.bf16.mxu1 %v4196_v60 }
 0x2f9   :  { %3934 = vmatmul.mubr.bf16.gmra.mrb[24].mxu1 %v4197_v62  ;;  %v919_v62 = vld [vmem:[%s4699_s7 + $0x40] sm:$0xff] }
 0x2fa   :  { %3937 = vmatprep.mubr.bf16.mxu1 %v4198_v63 }
 0x301   :  { %3938 = vmatmul.mubr.bf16.gmra.mrb[28].mxu1 %v4199_v0 }
 0x3bc   :  { %v3927_v7 = vpop.f32.mrb[16].mxu1 }
 0x3bd   :  { %v929_v10 = vmul.f32 %v3927_v7, %v913_v5  ;;  %v848_v11 = vpop.f32.mrb[17].mxu1  ;;  %v951_v7 = vld [vmem:[%s4704_s11 + $0x40] sm:$0xff] }
 0x3be   :  { %v927_v18 = vmul.f32 %v911_v6, %v848_v11  ;;  %v3928_v23 = vpop.f32.mrb[18].mxu1 }
 0x3bf   :  { %v961_v25 = vadd.f32 %v945_v8, %v929_v10  ;;  %v930_v26 = vmul.f32 %v3928_v23, %v914_v9  ;;  %v851_v28 = vpop.f32.mrb[19].mxu1  ;;  %v920_v8 = vld [vmem:[%s4699_s7 + $0x48] sm:$0xff] }
 0x3c0   :  { %v959_v31 = vadd.f32 %v943_v12, %v927_v18  ;;  %v928_v32 = vmul.f32 %v912_v17, %v851_v28  ;;  %v954_v17 = vld [vmem:[%s4704_s11 + $0x58] sm:$0xff] }
 0x3c1   :  { %4364 = vtanh.f32 %v961_v25  ;;  %v962_v33 = vadd.f32 %v946_v24, %v930_v26  ;;  %v952_v25 = vld [vmem:[%s4704_s11 + $0x48] sm:$0xff] }
 0x3c2   :  { %4366 = vtanh.f32 %v959_v31  ;;  %v960_v34 = vadd.f32 %v944_v29, %v928_v32 }
 0x3c3   :  { %4368 = vtanh.f32 %v962_v33  ;;  %v925_v33 = vld [vmem:[%s4699_s7 + $0x70] sm:$0xff] }
 0x3c4   :  { %4370 = vtanh.f32 %v960_v34  ;;  %v3931_v38 = vpop.f32.mrb[20].mxu1 }
 0x3c5   :  { %v933_v42 = vmul.f32 %v3931_v38, %v917_v36  ;;  %v864_v43 = vpop.f32.mrb[21].mxu1  ;;  %v923_v36 = vld [vmem:[%s4699_s7 + $0x60] sm:$0xff] }
 0x3c6   :  { %v931_v46 = vmul.f32 %v915_v37, %v864_v43  ;;  %v3932_v47 = vpop.f32.mrb[22].mxu1 }
 0x3c7   :  { %v965_v49 = vadd.f32 %v949_v39, %v933_v42  ;;  %v934_v50 = vmul.f32 %v3932_v47, %v918_v41  ;;  %v867_v51 = vpop.f32.mrb[23].mxu1  ;;  %v957_v39 = vld [vmem:[%s4704_s11 + $0x70] sm:$0xff]  ;;  %v926_v41 = vld [vmem:[%s4699_s7 + $0x78] sm:$0xff] }
 0x3c8   :  { %v963_v54 = vadd.f32 %v947_v44, %v931_v46  ;;  %v932_v55 = vmul.f32 %v916_v45, %v867_v51  ;;  %v955_v45 = vld [vmem:[%s4704_s11 + $0x60] sm:$0xff]  ;;  %v924_v46 = vld [vmem:[%s4699_s7 + $0x68] sm:$0xff]  ;;  %s4533_s7 = smov 31  }
 0x3c9   :  { %4372 = vtanh.f32 %v965_v49  ;;  %v966_v57 = vadd.f32 %v950_v48, %v934_v50  ;;  %v958_v50 = vld [vmem:[%s4704_s11 + $0x78] sm:$0xff]  ;;  %s3399_s10 = sld [smem:[%s5192_s0 + %s4533_s7]]  }
 0x3ca   :  { %4374 = vtanh.f32 %v963_v54  ;;  %v964_v58 = vadd.f32 %v948_v52, %v932_v55 }
 0x3cb   :  { %v4365_v60 = vpop.eup %4364  ;;  %4376 = vtanh.f32 %v966_v57  ;;  %v956_v57 = vld [vmem:[%s4704_s11 + $0x68] sm:$0xff]  ;;  %s4534_s11 = smov 32  }
 0x3cc   :  { %v4367_v63 = vpop.eup %4366  ;;  %4378 = vtanh.f32 %v964_v58  ;;  %v3935_v0 = vpop.f32.mrb[24].mxu1  ;;  %s3400_s14 = sld [smem:[%s5192_s0 + %s4534_s11]]  }
 0x3cd   :  { %v4369_v4 = vpop.eup %4368  ;;  %v937_v5 = vmul.f32 %v3935_v0, %v921_v59  ;;  %v880_v6 = vpop.f32.mrb[25].mxu1 }
 0x3ce   :  { %v4371_v9 = vpop.eup %4370  ;;  %v992_v10 = vpack.c.bf16 %v4369_v4, %v4365_v60  ;;  %v935_v11 = vmul.f32 %v919_v62, %v880_v6  ;;  %v3936_v12 = vpop.f32.mrb[26].mxu1 }
 0x3cf   :  { %v969_v18 = vadd.f32 %v953_v1, %v937_v5  ;;  %v938_v23 = vmul.f32 %v3936_v12, %v922_v3  ;;  %v883_v24 = vpop.f32.mrb[27].mxu1  ;;  %v991_v26 = vpack.c.bf16 %v4371_v9, %v4367_v63 }
 0x3d0   :  { %v967_v28 = vadd.f32 %v951_v7, %v935_v11  ;;  %v936_v29 = vmul.f32 %v920_v8, %v883_v24 }
 0x3d1   :  { %4380 = vtanh.f32 %v969_v18  ;;  %v970_v31 = vadd.f32 %v954_v17, %v938_v23  ;;  %3949 = vmatprep.mubr.msk.bf16.mxu0 %vm620_vm3, %v991_v26  ;;  %v4204_v17 = vld [vmem:[%s4749_s15] sm:$0xff]  }
 0x3d2   :  { %4382 = vtanh.f32 %v967_v28  ;;  %v968_v32 = vadd.f32 %v952_v25, %v936_v29  ;;  %3950 = vmatmul.mubr.msk.bf16.vlgmr.msra.gmra.mrb[32].mxu0 %vm620_vm3, %v992_v10  ;;  %3981 = vmatprep.mubr.bf16.mxu1 %v4204_v17  ;;  %v4212_v18 = vld [vmem:[%s4755_s19] sm:$0xff]  }
 0x3d3   :  { %v4373_v34 = vpop.eup %4372  ;;  %4384 = vtanh.f32 %v970_v31  ;;  %3997 = vmatprep.subr.bf16.mxu0 %v4212_v18 }
 0x3d4   :  { %v4375_v37 = vpop.eup %4374  ;;  %4386 = vtanh.f32 %v968_v32  ;;  %v3939_v38 = vpop.f32.mrb[28].mxu1  ;;  %3998 = vmatpush3.bf16.msra.mxu0 %v4212_v18 }
 0x3d5   :  { %v4377_v42 = vpop.eup %4376  ;;  %v941_v43 = vmul.f32 %v3939_v38, %v925_v33  ;;  %v896_v44 = vpop.f32.mrb[29].mxu1 }
 0x3d6   :  { %v4379_v47 = vpop.eup %4378  ;;  %v939_v48 = vmul.f32 %v923_v36, %v896_v44  ;;  %v3940_v49 = vpop.f32.mrb[30].mxu1  ;;  %v994_v51 = vpack.c.bf16 %v4377_v42, %v4373_v34 }
 0x3d7   :  { %v973_v52 = vadd.f32 %v957_v39, %v941_v43  ;;  %v942_v54 = vmul.f32 %v3940_v49, %v926_v41  ;;  %v899_v55 = vpop.f32.mrb[31].mxu1  ;;  %v993_v58 = vpack.c.bf16 %v4379_v47, %v4375_v37 }
 0x3d8   :  { %v971_v59 = vadd.f32 %v955_v45, %v939_v48  ;;  %v940_v60 = vmul.f32 %v924_v46, %v899_v55  ;;  %v4208_v55 = vld [vmem:[%s4749_s15 + $0x20] sm:$0xff]  }
 0x3d9   :  { %4388 = vtanh.f32 %v973_v52  ;;  %v974_v62 = vadd.f32 %v958_v50, %v942_v54  ;;  %3953 = vmatprep.mubr.msk.bf16.mxu0 %vm620_vm3, %v993_v58  ;;  %v4206_v52 = vld [vmem:[%s4749_s15 + $0x10] sm:$0xff]   ;;  %v4207_v54 = vld [vmem:[%s4749_s15 + $0x18] sm:$0xff]  }
 0x3da   :  { %4390 = vtanh.f32 %v971_v59  ;;  %v972_v63 = vadd.f32 %v956_v57, %v940_v60  ;;  %3954 = vmatmul.mubr.msk.bf16.gmra.mrb[36].mxu0 %vm620_vm3, %v994_v51  ;;  %v4205_v51 = vld [vmem:[%s4749_s15 + $0x8] sm:$0xff]   ;;  %v4210_v58 = vld [vmem:[%s4749_s15 + $0x30] sm:$0xff]   ;;  %v4211_v59 = vld [vmem:[%s4749_s15 + $0x38] sm:$0xff]  }
 0x3db   :  { %v4381_v0 = vpop.eup %4380  ;;  %4392 = vtanh.f32 %v974_v62  ;;  %v4209_v57 = vld [vmem:[%s4749_s15 + $0x28] sm:$0xff]   ;;  %v4214_v62 = vld [vmem:[%s4755_s19 + $0x10] sm:$0xff]  }
 0x3dc   :  { %v4383_v1 = vpop.eup %4382  ;;  %4394 = vtanh.f32 %v972_v63  ;;  %v4213_v60 = vld [vmem:[%s4755_s19 + $0x8] sm:$0xff]   ;;  %v4215_v63 = vld [vmem:[%s4755_s19 + $0x18] sm:$0xff]  }
 0x3dd   :  { %v4385_v3 = vpop.eup %4384  ;;  %3999 = vmatprep.subr.bf16.mxu0 %v4213_v60 }
 0x3de   :  { %v4387_v4 = vpop.eup %4386  ;;  %v996_v5 = vpack.c.bf16 %v4385_v3, %v4381_v0  ;;  %4000 = vmatpush3.bf16.msra.mxu0 %v4213_v60  ;;  %v1323_v0 = vld [vmem:[%s4771_s23 + $0x10] sm:$0xff] }
 0x3df   :  { %v995_v6 = vpack.c.bf16 %v4387_v4, %v4383_v1  ;;  %4001 = vmatprep.subr.bf16.mxu0 %v4214_v62  ;;  %v1321_v1 = vld [vmem:[%s4771_s23] sm:$0xff]  ;;  %v1355_v4 = vld [vmem:[%s4776_s27 + $0x10] sm:$0xff] }
 0x3e0   :  { %v1363_v60 = vld [vmem:[%s4776_s27 + $0x50] sm:$0xff] }
 0x3e1   :  { %3957 = vmatprep.mubr.msk.bf16.mxu0 %vm620_vm3, %v995_v6 }
 0x3e2   :  { %3958 = vmatmul.mubr.msk.bf16.gmra.mrb[40].mxu0 %vm620_vm3, %v996_v5  ;;  %v1324_v5 = vld [vmem:[%s4771_s23 + $0x18] sm:$0xff] }
 0x3e3   :  { %v4389_v7 = vpop.eup %4388  ;;  %4002 = vmatpush3.bf16.msra.mxu0 %v4214_v62  ;;  %v1332_v62 = vld [vmem:[%s4771_s23 + $0x58] sm:$0xff] }
 0x3e4   :  { %v4391_v8 = vpop.eup %4390  ;;  %4003 = vmatprep.subr.bf16.mxu0 %v4215_v63 }
 0x3e5   :  { %v4393_v9 = vpop.eup %4392 }
 0x3e6   :  { %v4395_v10 = vpop.eup %4394  ;;  %v998_v11 = vpack.c.bf16 %v4393_v9, %v4389_v7  ;;  %v1322_v9 = vld [vmem:[%s4771_s23 + $0x8] sm:$0xff] }
 0x3e7   :  { %v997_v12 = vpack.c.bf16 %v4395_v10, %v4391_v8  ;;  %4004 = vmatpush3.bf16.msra.mxu0 %v4215_v63  ;;  %v1353_v8 = vld [vmem:[%s4776_s27] sm:$0xff] }
 0x3e9   :  { %3961 = vmatprep.mubr.msk.bf16.mxu0 %vm620_vm3, %v997_v12  ;;  %v1356_v12 = vld [vmem:[%s4776_s27 + $0x18] sm:$0xff] }
 0x3ea   :  { %3962 = vmatmul.mubr.msk.bf16.gmra.mrb[44].mxu0 %vm620_vm3, %v998_v11 }
 0x4a5   :  { %v3951_v23 = vpop.f32.mrb[32].mxu0 }
 0x4a6   :  { %v1089_v24 = vpop.f32.mrb[33].mxu0 }
 0x4a7   :  { %v3952_v25 = vpop.f32.mrb[34].mxu0 }
 0x4a8   :  { %v1169_v26 = vpack.c.bf16 %v3952_v25, %v3951_v23  ;;  %v1092_v28 = vpop.f32.mrb[35].mxu0 }
 0x4a9   :  { %v1168_v29 = vpack.c.bf16 %v1092_v28, %v1089_v24  ;;  %v1354_v24 = vld [vmem:[%s4776_s27 + $0x8] sm:$0xff] }
 0x4ab   :  { %3965 = vmatprep.subr.bf16.mxu1 %v1168_v29 }
 0x4ac   :  { %3966 = vmatpush3.bf16.msra.mxu1 %v1168_v29 }
 0x4ad   :  { %v3955_v31 = vpop.f32.mrb[36].mxu0  ;;  %3967 = vmatprep.subr.bf16.mxu1 %v1169_v26 }
 0x4ae   :  { %v1105_v32 = vpop.f32.mrb[37].mxu0 }
 0x4af   :  { %v3956_v33 = vpop.f32.mrb[38].mxu0 }
 0x4b0   :  { %v1171_v34 = vpack.c.bf16 %v3956_v33, %v3955_v31  ;;  %v1108_v36 = vpop.f32.mrb[39].mxu0  ;;  %3968 = vmatpush3.bf16.msra.mxu1 %v1169_v26  ;;  %v1327_v31 = vld [vmem:[%s4771_s23 + $0x30] sm:$0xff] }
 0x4b1   :  { %v1170_v37 = vpack.c.bf16 %v1108_v36, %v1105_v32  ;;  %v1325_v32 = vld [vmem:[%s4771_s23 + $0x20] sm:$0xff]  ;;  %v1328_v36 = vld [vmem:[%s4771_s23 + $0x38] sm:$0xff] }
 0x4b3   :  { %3969 = vmatprep.subr.bf16.mxu1 %v1170_v37 }
 0x4b4   :  { %3970 = vmatpush3.bf16.msra.mxu1 %v1170_v37 }
 0x4b5   :  { %v3959_v38 = vpop.f32.mrb[40].mxu0  ;;  %3971 = vmatprep.subr.bf16.mxu1 %v1171_v34 }
 0x4b6   :  { %v1121_v39 = vpop.f32.mrb[41].mxu0 }
 0x4b7   :  { %v3960_v41 = vpop.f32.mrb[42].mxu0 }
 0x4b8   :  { %v1173_v42 = vpack.c.bf16 %v3960_v41, %v3959_v38  ;;  %v1124_v43 = vpop.f32.mrb[43].mxu0  ;;  %3972 = vmatpush3.bf16.msra.mxu1 %v1171_v34  ;;  %v1359_v34 = vld [vmem:[%s4776_s27 + $0x30] sm:$0xff]  ;;  %v1326_v41 = vld [vmem:[%s4771_s23 + $0x28] sm:$0xff] }
 0x4b9   :  { %v1172_v44 = vpack.c.bf16 %v1124_v43, %v1121_v39  ;;  %v1357_v39 = vld [vmem:[%s4776_s27 + $0x20] sm:$0xff] }
 0x4bb   :  { %3973 = vmatprep.subr.bf16.mxu1 %v1172_v44 }
 0x4bc   :  { %3974 = vmatpush3.bf16.msra.mxu1 %v1172_v44  ;;  %v1360_v44 = vld [vmem:[%s4776_s27 + $0x38] sm:$0xff] }
 0x4bd   :  { %v3963_v45 = vpop.f32.mrb[44].mxu0  ;;  %3975 = vmatprep.subr.bf16.mxu1 %v1173_v42 }
 0x4be   :  { %v1137_v46 = vpop.f32.mrb[45].mxu0 }
 0x4bf   :  { %v3964_v47 = vpop.f32.mrb[46].mxu0 }
 0x4c0   :  { %v1175_v48 = vpack.c.bf16 %v3964_v47, %v3963_v45  ;;  %v1140_v49 = vpop.f32.mrb[47].mxu0  ;;  %3976 = vmatpush3.bf16.msra.mxu1 %v1173_v42 }
 0x4c1   :  { %v1174_v50 = vpack.c.bf16 %v1140_v49, %v1137_v46 }
 0x4c3   :  { %3977 = vmatprep.subr.bf16.mxu1 %v1174_v50 }
 0x4c4   :  { %3978 = vmatpush3.bf16.msra.mxu1 %v1174_v50 }
 0x4c5   :  { %3979 = vmatprep.subr.bf16.mxu1 %v1175_v48 }
 0x4c8   :  { %3980 = vmatpush3.bf16.msra.mxu1 %v1175_v48  ;;  %v1358_v48 = vld [vmem:[%s4776_s27 + $0x28] sm:$0xff] }
 0x4cb   :  { %3982 = vmatmul.mubr.bf16.vlgmr.msra.gmra.mrb[32].mxu1 %v4205_v51 }
 0x4cc   :  { %3985 = vmatprep.mubr.bf16.mxu1 %v4206_v52 }
 0x4d3   :  { %3986 = vmatmul.mubr.bf16.gmra.mrb[36].mxu1 %v4207_v54  ;;  %v1331_v54 = vld [vmem:[%s4771_s23 + $0x50] sm:$0xff] }
 0x4d4   :  { %3989 = vmatprep.mubr.bf16.mxu1 %v4208_v55 }
 0x4db   :  { %3990 = vmatmul.mubr.bf16.gmra.mrb[40].mxu1 %v4209_v57  ;;  %v1329_v57 = vld [vmem:[%s4771_s23 + $0x40] sm:$0xff] }
 0x4dc   :  { %3993 = vmatprep.mubr.bf16.mxu1 %v4210_v58 }
 0x4e3   :  { %3994 = vmatmul.mubr.bf16.gmra.mrb[44].mxu1 %v4211_v59 }
 0x59e   :  { %v3983_v3 = vpop.f32.mrb[32].mxu1 }
 0x59f   :  { %v1339_v6 = vmul.f32 %v3983_v3, %v1323_v0  ;;  %v1258_v7 = vpop.f32.mrb[33].mxu1  ;;  %v1361_v3 = vld [vmem:[%s4776_s27 + $0x40] sm:$0xff] }
 0x5a0   :  { %v1337_v10 = vmul.f32 %v1321_v1, %v1258_v7  ;;  %v3984_v11 = vpop.f32.mrb[34].mxu1 }
 0x5a1   :  { %v1371_v17 = vadd.f32 %v1355_v4, %v1339_v6  ;;  %v1340_v18 = vmul.f32 %v3984_v11, %v1324_v5  ;;  %v1261_v23 = vpop.f32.mrb[35].mxu1  ;;  %v1330_v4 = vld [vmem:[%s4771_s23 + $0x48] sm:$0xff] }
 0x5a2   :  { %v1369_v25 = vadd.f32 %v1353_v8, %v1337_v10  ;;  %v1338_v26 = vmul.f32 %v1322_v9, %v1261_v23  ;;  %v1364_v9 = vld [vmem:[%s4776_s27 + $0x58] sm:$0xff] }
 0x5a3   :  { %4396 = vtanh.f32 %v1371_v17  ;;  %v1372_v28 = vadd.f32 %v1356_v12, %v1340_v18  ;;  %v1362_v17 = vld [vmem:[%s4776_s27 + $0x48] sm:$0xff] }
 0x5a4   :  { %4398 = vtanh.f32 %v1369_v25  ;;  %v1370_v29 = vadd.f32 %v1354_v24, %v1338_v26 }
 0x5a5   :  { %4400 = vtanh.f32 %v1372_v28 }
 0x5a6   :  { %4402 = vtanh.f32 %v1370_v29  ;;  %v3987_v33 = vpop.f32.mrb[36].mxu1 }
 0x5a7   :  { %v1343_v37 = vmul.f32 %v3987_v33, %v1327_v31  ;;  %v1274_v38 = vpop.f32.mrb[37].mxu1 }
 0x5a8   :  { %v1341_v42 = vmul.f32 %v1325_v32, %v1274_v38  ;;  %v3988_v43 = vpop.f32.mrb[38].mxu1 }
 0x5a9   :  { %v1375_v45 = vadd.f32 %v1359_v34, %v1343_v37  ;;  %v1344_v46 = vmul.f32 %v3988_v43, %v1328_v36  ;;  %v1277_v47 = vpop.f32.mrb[39].mxu1  ;;  %v1367_v34 = vld [vmem:[%s4776_s27 + $0x70] sm:$0xff]  ;;  %v1336_v36 = vld [vmem:[%s4771_s23 + $0x78] sm:$0xff] }
 0x5aa   :  { %v1373_v49 = vadd.f32 %v1357_v39, %v1341_v42  ;;  %v1342_v50 = vmul.f32 %v1326_v41, %v1277_v47  ;;  %v1365_v41 = vld [vmem:[%s4776_s27 + $0x60] sm:$0xff]  ;;  %v1334_v42 = vld [vmem:[%s4771_s23 + $0x68] sm:$0xff] }
 0x5ab   :  { %4404 = vtanh.f32 %v1375_v45  ;;  %v1376_v51 = vadd.f32 %v1360_v44, %v1344_v46  ;;  %v1368_v46 = vld [vmem:[%s4776_s27 + $0x78] sm:$0xff] }
 0x5ac   :  { %4406 = vtanh.f32 %v1373_v49  ;;  %v1374_v52 = vadd.f32 %v1358_v48, %v1342_v50 }
 0x5ad   :  { %v4397_v55 = vpop.eup %4396  ;;  %4408 = vtanh.f32 %v1376_v51  ;;  %v1366_v51 = vld [vmem:[%s4776_s27 + $0x68] sm:$0xff] }
 0x5ae   :  { %v4399_v58 = vpop.eup %4398  ;;  %4410 = vtanh.f32 %v1374_v52  ;;  %v3991_v59 = vpop.f32.mrb[40].mxu1  ;;  %v4812_v24 = vadd.f32 %v4397_v55, %v4615_v40  ;;  %v1333_v40 = vld [vmem:[%s4771_s23 + $0x60] sm:$0xff] }
 0x5af   :  { %v4401_v63 = vpop.eup %4400  ;;  %v1347_v0 = vmul.f32 %v3991_v59, %v1331_v54  ;;  %v1290_v1 = vpop.f32.mrb[41].mxu1  ;;  %v4806_v18 = vadd.f32 %v4399_v58, %v4604_v27 }
 0x5b0   :  { %v4403_v5 = vpop.eup %4402  ;;  %v4801_v6 = vadd.f32 %v4401_v63, %v4607_v30  ;;  %v1345_v7 = vmul.f32 %v1329_v57, %v1290_v1  ;;  %v3992_v8 = vpop.f32.mrb[42].mxu1 }
 0x5b1   :  { %v1379_v10 = vadd.f32 %v1363_v60, %v1347_v0  ;;  %v1348_v11 = vmul.f32 %v3992_v8, %v1332_v62  ;;  %v1293_v12 = vpop.f32.mrb[43].mxu1  ;;  %v4809_v23 = vadd.f32 %v4403_v5, %v4611_v35  ;;  %v1335_v35 = vld [vmem:[%s4771_s23 + $0x70] sm:$0xff] }
 0x5b2   :  { %v1377_v30 = vadd.f32 %v1361_v3, %v1345_v7  ;;  %v1346_v25 = vmul.f32 %v1330_v4, %v1293_v12  ;;  %v1418_v29 = vpack.c.bf16 %v4801_v6, %v4812_v24 }
 0x5b3   :  { %4412 = vtanh.f32 %v1379_v10  ;;  %v1380_v26 = vadd.f32 %v1364_v9, %v1348_v11  ;;  %v1417_v28 = vpack.c.bf16 %v4809_v23, %v4806_v18 }
 0x5b4   :  { %4414 = vtanh.f32 %v1377_v30  ;;  %v1378_v27 = vadd.f32 %v1362_v17, %v1346_v25 }
 0x5b5   :  { %v4405_v31 = vpop.eup %4404  ;;  %4416 = vtanh.f32 %v1380_v26  ;;  %4005 = vmatprep.mubr.msk.bf16.mxu0 %vm620_vm3, %v1417_v28 }
 0x5b6   :  { %v4407_v32 = vpop.eup %4406  ;;  %4418 = vtanh.f32 %v1378_v27  ;;  %v3995_v33 = vpop.f32.mrb[44].mxu1  ;;  %4006 = vmatmul.mubr.msk.bf16.vlgmr.msra.gmra.mrb[48].mxu0 %vm620_vm3, %v1418_v29  ;;  %v4838_v58 = vadd.f32 %v4405_v31, %v4637_v2 }
 0x5b7   :  { %v4409_v37 = vpop.eup %4408  ;;  %v1351_v38 = vmul.f32 %v3995_v33, %v1335_v35  ;;  %v1306_v39 = vpop.f32.mrb[45].mxu1  ;;  %v4832_v52 = vadd.f32 %v4407_v32, %v4626_v53 }
 0x5b8   :  { %v4411_v43 = vpop.eup %4410  ;;  %v1349_v44 = vmul.f32 %v1333_v40, %v1306_v39  ;;  %v3996_v45 = vpop.f32.mrb[46].mxu1  ;;  %v4828_v47 = vadd.f32 %v4409_v37, %v4629_v56 }
 0x5b9   :  { %v1383_v48 = vadd.f32 %v1367_v34, %v1351_v38  ;;  %v1352_v49 = vmul.f32 %v3996_v45, %v1336_v36  ;;  %v1309_v50 = vpop.f32.mrb[47].mxu1  ;;  %v4835_v54 = vadd.f32 %v4411_v43, %v4633_v61 }
 0x5ba   :  { %v1381_v55 = vadd.f32 %v1365_v41, %v1349_v44  ;;  %v1350_v57 = vmul.f32 %v1334_v42, %v1309_v50  ;;  %v1420_v62 = vpack.c.bf16 %v4828_v47, %v4838_v58  ;;  %v4219_v50 = vld [vmem:[%s4885_s1 + $0x18] sm:$0xff]  }
 0x5bb   :  { %4420 = vtanh.f32 %v1383_v48  ;;  %v1384_v59 = vadd.f32 %v1368_v46, %v1352_v49  ;;  %v1419_v56 = vpack.c.bf16 %v4835_v54, %v4832_v52  ;;  %v4217_v48 = vld [vmem:[%s4885_s1 + $0x8] sm:$0xff]   ;;  %v4218_v49 = vld [vmem:[%s4885_s1 + $0x10] sm:$0xff]  }
 0x5bc   :  { %4422 = vtanh.f32 %v1381_v55  ;;  %v1382_v60 = vadd.f32 %v1366_v51, %v1350_v57  ;;  %v4220_v51 = vld [vmem:[%s4885_s1 + $0x20] sm:$0xff]   ;;  %v4221_v55 = vld [vmem:[%s4885_s1 + $0x28] sm:$0xff]   ;;  %v4222_v57 = vld [vmem:[%s4885_s1 + $0x30] sm:$0xff]  }
 0x5bd   :  { %v4413_v53 = vpop.eup %4412  ;;  %4424 = vtanh.f32 %v1384_v59  ;;  %4009 = vmatprep.mubr.msk.bf16.mxu0 %vm620_vm3, %v1419_v56  ;;  %v4223_v59 = vld [vmem:[%s4885_s1 + $0x38] sm:$0xff]   ;;  %v4225_v56 = vld [vmem:[%s4891_s5 + $0x8] sm:$0xff]  }
 0x5be   :  { %v4415_v61 = vpop.eup %4414  ;;  %4426 = vtanh.f32 %v1382_v60  ;;  %4010 = vmatmul.mubr.msk.bf16.gmra.mrb[52].mxu0 %vm620_vm3, %v1420_v62  ;;  %v4856_v4 = vadd.f32 %v4413_v53, %v4652_v16  ;;  %v4226_v60 = vld [vmem:[%s4891_s5 + $0x10] sm:$0xff]   ;;  %v4227_v62 = vld [vmem:[%s4891_s5 + $0x18] sm:$0xff]  }
 0x5bf   :  { %v4417_v2 = vpop.eup %4416  ;;  %v4850_v1 = vadd.f32 %v4415_v61, %v4646_v13  ;;  %v1749_v53 = vld [vmem:[%s4907_s9 + $0x10] sm:$0xff]  ;;  %v1747_v61 = vld [vmem:[%s4907_s9] sm:$0xff] }
 0x5c0   :  { %v4419_v63 = vpop.eup %4418  ;;  %v4847_v0 = vadd.f32 %v4417_v2, %v4648_v14 }
 0x5c1   :  { %v4853_v3 = vadd.f32 %v4419_v63, %v4650_v15  ;;  %v1781_v63 = vld [vmem:[%s4912_s13 + $0x10] sm:$0xff] }
 0x5c2   :  { %v1422_v7 = vpack.c.bf16 %v4847_v0, %v4856_v4 }
 0x5c3   :  { %v1421_v5 = vpack.c.bf16 %v4853_v3, %v4850_v1 }
 0x5c5   :  { %v4421_v8 = vpop.eup %4420  ;;  %4013 = vmatprep.mubr.msk.bf16.mxu0 %vm620_vm3, %v1421_v5  ;;  %v1750_v5 = vld [vmem:[%s4907_s9 + $0x18] sm:$0xff] }
 0x5c6   :  { %v4423_v14 = vpop.eup %4422  ;;  %4014 = vmatmul.mubr.msk.bf16.gmra.mrb[56].mxu0 %vm620_vm3, %v1422_v7  ;;  %v4874_v11 = vadd.f32 %v4421_v8, %v4666_v22 }
 0x5c7   :  { %v4425_v13 = vpop.eup %4424  ;;  %v4868_v16 = vadd.f32 %v4423_v14, %v4660_v19  ;;  %v4216_v19 = vld [vmem:[%s4885_s1] sm:$0xff]   ;;  %s4523_s1 = smov 26  }
 0x5c8   :  { %v4427_v9 = vpop.eup %4426  ;;  %v4865_v15 = vadd.f32 %v4425_v13, %v4662_v20  ;;  %4037 = vmatprep.mubr.bf16.mxu1 %v4216_v19  ;;  %v4224_v20 = vld [vmem:[%s4891_s5] sm:$0xff]   ;;  %v1748_v13 = vld [vmem:[%s4907_s9 + $0x8] sm:$0xff]  ;;  %s5124_s4 = sld [smem:[%s5192_s0 + %s4523_s1]]   ;;  %s4524_s5 = smov 22  }
 0x5c9   :  { %v4871_v10 = vadd.f32 %v4427_v9, %v4664_v21  ;;  %4053 = vmatprep.subr.bf16.mxu0 %v4224_v20  ;;  %v1779_v14 = vld [vmem:[%s4912_s13] sm:$0xff]  ;;  %s3390_s8 = sld [smem:[%s5192_s0 + %s4524_s5]]  }
 0x5ca   :  { %v1424_v17 = vpack.c.bf16 %v4865_v15, %v4874_v11  ;;  %4054 = vmatpush3.bf16.msra.mxu0 %v4224_v20 }
 0x5cb   :  { %v1423_v12 = vpack.c.bf16 %v4871_v10, %v4868_v16  ;;  %4055 = vmatprep.subr.bf16.mxu0 %v4225_v56 }
 0x5cd   :  { %4017 = vmatprep.mubr.msk.bf16.mxu0 %vm620_vm3, %v1423_v12 }
 0x5ce   :  { %4018 = vmatmul.mubr.msk.bf16.gmra.mrb[60].mxu0 %vm620_vm3, %v1424_v17  ;;  %v1782_v17 = vld [vmem:[%s4912_s13 + $0x18] sm:$0xff] }
 0x5cf   :  { %4056 = vmatpush3.bf16.msra.mxu0 %v4225_v56  ;;  %v1789_v56 = vld [vmem:[%s4912_s13 + $0x50] sm:$0xff] }
 0x5d0   :  { %4057 = vmatprep.subr.bf16.mxu0 %v4226_v60 }
 0x5d3   :  { %4058 = vmatpush3.bf16.msra.mxu0 %v4226_v60  ;;  %v1758_v60 = vld [vmem:[%s4907_s9 + $0x58] sm:$0xff] }
 0x5d4   :  { %4059 = vmatprep.subr.bf16.mxu0 %v4227_v62 }
 0x5d7   :  { %4060 = vmatpush3.bf16.msra.mxu0 %v4227_v62 }
 0x689   :  { %v4007_v21 = vpop.f32.mrb[48].mxu0 }
 0x68a   :  { %v1515_v22 = vpop.f32.mrb[49].mxu0 }
 0x68b   :  { %v4008_v30 = vpop.f32.mrb[50].mxu0 }
 0x68c   :  { %v1595_v25 = vpack.c.bf16 %v4008_v30, %v4007_v21  ;;  %v1518_v26 = vpop.f32.mrb[51].mxu0 }
 0x68d   :  { %v1594_v28 = vpack.c.bf16 %v1518_v26, %v1515_v22  ;;  %v1780_v22 = vld [vmem:[%s4912_s13 + $0x8] sm:$0xff] }
 0x68f   :  { %4021 = vmatprep.subr.bf16.mxu1 %v1594_v28 }
 0x690   :  { %4022 = vmatpush3.bf16.msra.mxu1 %v1594_v28 }
 0x691   :  { %v4011_v29 = vpop.f32.mrb[52].mxu0  ;;  %4023 = vmatprep.subr.bf16.mxu1 %v1595_v25 }
 0x692   :  { %v1531_v27 = vpop.f32.mrb[53].mxu0 }
 0x693   :  { %v4012_v35 = vpop.f32.mrb[54].mxu0 }
 0x694   :  { %v1597_v31 = vpack.c.bf16 %v4012_v35, %v4011_v29  ;;  %v1534_v40 = vpop.f32.mrb[55].mxu0  ;;  %4024 = vmatpush3.bf16.msra.mxu1 %v1595_v25  ;;  %v1753_v29 = vld [vmem:[%s4907_s9 + $0x30] sm:$0xff] }
 0x695   :  { %v1596_v32 = vpack.c.bf16 %v1534_v40, %v1531_v27  ;;  %v1751_v27 = vld [vmem:[%s4907_s9 + $0x20] sm:$0xff]  ;;  %v1754_v40 = vld [vmem:[%s4907_s9 + $0x38] sm:$0xff] }
 0x697   :  { %4025 = vmatprep.subr.bf16.mxu1 %v1596_v32 }
 0x698   :  { %4026 = vmatpush3.bf16.msra.mxu1 %v1596_v32 }
 0x699   :  { %v4015_v33 = vpop.f32.mrb[56].mxu0  ;;  %4027 = vmatprep.subr.bf16.mxu1 %v1597_v31 }
 0x69a   :  { %v1547_v34 = vpop.f32.mrb[57].mxu0 }
 0x69b   :  { %v4016_v36 = vpop.f32.mrb[58].mxu0 }
 0x69c   :  { %v1599_v37 = vpack.c.bf16 %v4016_v36, %v4015_v33  ;;  %v1550_v38 = vpop.f32.mrb[59].mxu0  ;;  %4028 = vmatpush3.bf16.msra.mxu1 %v1597_v31  ;;  %v1785_v31 = vld [vmem:[%s4912_s13 + $0x30] sm:$0xff]  ;;  %v1752_v36 = vld [vmem:[%s4907_s9 + $0x28] sm:$0xff] }
 0x69d   :  { %v1598_v39 = vpack.c.bf16 %v1550_v38, %v1547_v34  ;;  %v1783_v34 = vld [vmem:[%s4912_s13 + $0x20] sm:$0xff] }
 0x69f   :  { %4029 = vmatprep.subr.bf16.mxu1 %v1598_v39 }
 0x6a0   :  { %4030 = vmatpush3.bf16.msra.mxu1 %v1598_v39  ;;  %v1786_v39 = vld [vmem:[%s4912_s13 + $0x38] sm:$0xff] }
 0x6a1   :  { %v4019_v41 = vpop.f32.mrb[60].mxu0  ;;  %4031 = vmatprep.subr.bf16.mxu1 %v1599_v37 }
 0x6a2   :  { %v1563_v42 = vpop.f32.mrb[61].mxu0 }
 0x6a3   :  { %v4020_v43 = vpop.f32.mrb[62].mxu0 }
 0x6a4   :  { %v1601_v44 = vpack.c.bf16 %v4020_v43, %v4019_v41  ;;  %v1566_v45 = vpop.f32.mrb[63].mxu0  ;;  %4032 = vmatpush3.bf16.msra.mxu1 %v1599_v37 }
 0x6a5   :  { %v1600_v46 = vpack.c.bf16 %v1566_v45, %v1563_v42 }
 0x6a7   :  { %4033 = vmatprep.subr.bf16.mxu1 %v1600_v46 }
 0x6a8   :  { %4034 = vmatpush3.bf16.msra.mxu1 %v1600_v46 }
 0x6a9   :  { %4035 = vmatprep.subr.bf16.mxu1 %v1601_v44 }
 0x6ac   :  { %4036 = vmatpush3.bf16.msra.mxu1 %v1601_v44  ;;  %v1784_v44 = vld [vmem:[%s4912_s13 + $0x28] sm:$0xff] }
 0x6af   :  { %4038 = vmatmul.mubr.bf16.vlgmr.msra.gmra.mrb[48].mxu1 %v4217_v48 }
 0x6b0   :  { %4041 = vmatprep.mubr.bf16.mxu1 %v4218_v49 }
 0x6b7   :  { %4042 = vmatmul.mubr.bf16.gmra.mrb[52].mxu1 %v4219_v50  ;;  %v1757_v50 = vld [vmem:[%s4907_s9 + $0x50] sm:$0xff] }
 0x6b8   :  { %4045 = vmatprep.mubr.bf16.mxu1 %v4220_v51 }
 0x6bf   :  { %4046 = vmatmul.mubr.bf16.gmra.mrb[56].mxu1 %v4221_v55  ;;  %v1755_v55 = vld [vmem:[%s4907_s9 + $0x40] sm:$0xff] }
 0x6c0   :  { %4049 = vmatprep.mubr.bf16.mxu1 %v4222_v57 }
 0x6c7   :  { %4050 = vmatmul.mubr.bf16.gmra.mrb[60].mxu1 %v4223_v59 }
 0x782   :  { %v4039_v2 = vpop.f32.mrb[48].mxu1 }
 0x783   :  { %v1765_v7 = vmul.f32 %v4039_v2, %v1749_v53  ;;  %v1684_v8 = vpop.f32.mrb[49].mxu1  ;;  %v1787_v2 = vld [vmem:[%s4912_s13 + $0x40] sm:$0xff] }
 0x784   :  { %v1763_v9 = vmul.f32 %v1747_v61, %v1684_v8  ;;  %v4040_v12 = vpop.f32.mrb[50].mxu1 }
 0x785   :  { %v1797_v19 = vadd.f32 %v1781_v63, %v1765_v7  ;;  %v1766_v20 = vmul.f32 %v4040_v12, %v1750_v5  ;;  %v1687_v21 = vpop.f32.mrb[51].mxu1  ;;  %v1756_v63 = vld [vmem:[%s4907_s9 + $0x48] sm:$0xff] }
 0x786   :  { %v1795_v30 = vadd.f32 %v1779_v14, %v1763_v9  ;;  %v1764_v25 = vmul.f32 %v1748_v13, %v1687_v21  ;;  %v1790_v13 = vld [vmem:[%s4912_s13 + $0x58] sm:$0xff] }
 0x787   :  { %4428 = vtanh.f32 %v1797_v19  ;;  %v1798_v26 = vadd.f32 %v1782_v17, %v1766_v20  ;;  %v1788_v19 = vld [vmem:[%s4912_s13 + $0x48] sm:$0xff] }
 0x788   :  { %4430 = vtanh.f32 %v1795_v30  ;;  %v1796_v28 = vadd.f32 %v1780_v22, %v1764_v25 }
 0x789   :  { %4432 = vtanh.f32 %v1798_v26  ;;  %v1761_v26 = vld [vmem:[%s4907_s9 + $0x70] sm:$0xff] }
 0x78a   :  { %4434 = vtanh.f32 %v1796_v28  ;;  %v4043_v35 = vpop.f32.mrb[52].mxu1 }
 0x78b   :  { %v1769_v32 = vmul.f32 %v4043_v35, %v1753_v29  ;;  %v1700_v33 = vpop.f32.mrb[53].mxu1  ;;  %v1759_v29 = vld [vmem:[%s4907_s9 + $0x60] sm:$0xff] }
 0x78c   :  { %v1767_v37 = vmul.f32 %v1751_v27, %v1700_v33  ;;  %v4044_v38 = vpop.f32.mrb[54].mxu1 }
 0x78d   :  { %v1801_v41 = vadd.f32 %v1785_v31, %v1769_v32  ;;  %v1770_v42 = vmul.f32 %v4044_v38, %v1754_v40  ;;  %v1703_v43 = vpop.f32.mrb[55].mxu1  ;;  %v1793_v31 = vld [vmem:[%s4912_s13 + $0x70] sm:$0xff]  ;;  %v1762_v40 = vld [vmem:[%s4907_s9 + $0x78] sm:$0xff] }
 0x78e   :  { %v1799_v45 = vadd.f32 %v1783_v34, %v1767_v37  ;;  %v1768_v46 = vmul.f32 %v1752_v36, %v1703_v43  ;;  %v1791_v36 = vld [vmem:[%s4912_s13 + $0x60] sm:$0xff]  ;;  %v1760_v37 = vld [vmem:[%s4907_s9 + $0x68] sm:$0xff]  ;;  %s4525_s9 = smov 23  }
 0x78f   :  { %4436 = vtanh.f32 %v1801_v41  ;;  %v1802_v48 = vadd.f32 %v1786_v39, %v1770_v42  ;;  %v1794_v42 = vld [vmem:[%s4912_s13 + $0x78] sm:$0xff]  ;;  %s3391_s12 = sld [smem:[%s5192_s0 + %s4525_s9]]  }
 0x790   :  { %4438 = vtanh.f32 %v1799_v45  ;;  %v1800_v49 = vadd.f32 %v1784_v44, %v1768_v46 }
 0x791   :  { %v4429_v51 = vpop.eup %4428  ;;  %4440 = vtanh.f32 %v1802_v48  ;;  %v1792_v48 = vld [vmem:[%s4912_s13 + $0x68] sm:$0xff]  ;;  %s4526_s13 = smov 24  }
 0x792   :  { %v4431_v57 = vpop.eup %4430  ;;  %4442 = vtanh.f32 %v1800_v49  ;;  %v4047_v59 = vpop.f32.mrb[56].mxu1  ;;  %s3392_s16 = sld [smem:[%s5192_s0 + %s4526_s13]]  }
 0x793   :  { %v4433_v62 = vpop.eup %4432  ;;  %v1773_v53 = vmul.f32 %v4047_v59, %v1757_v50  ;;  %v1716_v61 = vpop.f32.mrb[57].mxu1 }
 0x794   :  { %v4435_v5 = vpop.eup %4434  ;;  %v1828_v7 = vpack.c.bf16 %v4433_v62, %v4429_v51  ;;  %v1771_v8 = vmul.f32 %v1755_v55, %v1716_v61  ;;  %v4048_v14 = vpop.f32.mrb[58].mxu1 }
 0x795   :  { %v1805_v9 = vadd.f32 %v1789_v56, %v1773_v53  ;;  %v1774_v12 = vmul.f32 %v4048_v14, %v1758_v60  ;;  %v1719_v17 = vpop.f32.mrb[59].mxu1  ;;  %v1827_v20 = vpack.c.bf16 %v4435_v5, %v4431_v57 }
 0x796   :  { %v1803_v21 = vadd.f32 %v1787_v2, %v1771_v8  ;;  %v1772_v22 = vmul.f32 %v1756_v63, %v1719_v17 }
 0x797   :  { %4444 = vtanh.f32 %v1805_v9  ;;  %v1806_v30 = vadd.f32 %v1790_v13, %v1774_v12  ;;  %4061 = vmatprep.mubr.msk.bf16.mxu0 %vm620_vm3, %v1827_v20  ;;  %v4228_v13 = vld [vmem:[%s4957_s17] sm:$0xff]  }
 0x798   :  { %4446 = vtanh.f32 %v1803_v21  ;;  %v1804_v25 = vadd.f32 %v1788_v19, %v1772_v22  ;;  %4062 = vmatmul.mubr.msk.bf16.vlgmr.msra.gmra.mrb[64].mxu0 %vm620_vm3, %v1828_v7  ;;  %4093 = vmatprep.mubr.bf16.mxu1 %v4228_v13  ;;  %v2159_v13 = vld [vmem:[%s4991_s25 + $0x10] sm:$0xff] }
 0x799   :  { %v4437_v28 = vpop.eup %4436  ;;  %4448 = vtanh.f32 %v1806_v30 }
 0x79a   :  { %v4439_v27 = vpop.eup %4438  ;;  %4450 = vtanh.f32 %v1804_v25  ;;  %v4051_v35 = vpop.f32.mrb[60].mxu1 }
 0x79b   :  { %v4441_v32 = vpop.eup %4440  ;;  %v1777_v33 = vmul.f32 %v4051_v35, %v1761_v26  ;;  %v1732_v34 = vpop.f32.mrb[61].mxu1 }
 0x79c   :  { %v4443_v38 = vpop.eup %4442  ;;  %v1775_v39 = vmul.f32 %v1759_v29, %v1732_v34  ;;  %v4052_v41 = vpop.f32.mrb[62].mxu1  ;;  %v1830_v43 = vpack.c.bf16 %v4441_v32, %v4437_v28 }
 0x79d   :  { %v1809_v44 = vadd.f32 %v1793_v31, %v1777_v33  ;;  %v1778_v45 = vmul.f32 %v4052_v41, %v1762_v40  ;;  %v1735_v46 = vpop.f32.mrb[63].mxu1  ;;  %v1829_v49 = vpack.c.bf16 %v4443_v38, %v4439_v27 }
 0x79e   :  { %v1807_v50 = vadd.f32 %v1791_v36, %v1775_v39  ;;  %v1776_v51 = vmul.f32 %v1760_v37, %v1735_v46  ;;  %v4233_v46 = vld [vmem:[%s4957_s17 + $0x28] sm:$0xff]  }
 0x79f   :  { %4452 = vtanh.f32 %v1809_v44  ;;  %v1810_v55 = vadd.f32 %v1794_v42, %v1778_v45  ;;  %4065 = vmatprep.mubr.msk.bf16.mxu0 %vm620_vm3, %v1829_v49  ;;  %v4229_v42 = vld [vmem:[%s4957_s17 + $0x8] sm:$0xff]   ;;  %v4231_v44 = vld [vmem:[%s4957_s17 + $0x18] sm:$0xff]   ;;  %v4232_v45 = vld [vmem:[%s4957_s17 + $0x20] sm:$0xff]  }
 0x7a0   :  { %4454 = vtanh.f32 %v1807_v50  ;;  %v1808_v57 = vadd.f32 %v1792_v48, %v1776_v51  ;;  %4066 = vmatmul.mubr.msk.bf16.gmra.mrb[68].mxu0 %vm620_vm3, %v1830_v43  ;;  %v4230_v43 = vld [vmem:[%s4957_s17 + $0x10] sm:$0xff]   ;;  %v4235_v49 = vld [vmem:[%s4957_s17 + $0x38] sm:$0xff]   ;;  %v4236_v50 = vld [vmem:[%s4970_s21 + $0x40] sm:$0xff]  }
 0x7a1   :  { %v4445_v59 = vpop.eup %4444  ;;  %4456 = vtanh.f32 %v1810_v55  ;;  %v4234_v48 = vld [vmem:[%s4957_s17 + $0x30] sm:$0xff]   ;;  %v4237_v51 = vld [vmem:[%s4970_s21] sm:$0xff]   ;;  %3736 = vmatprep.subr.bf16.mxu0 %v4236_v50  ;;  %v4238_v55 = vld [vmem:[%s4970_s21 + $0x48] sm:$0xff]   ;;  %s4527_s17 = smov 29  }
 0x7a2   :  { %v4447_v56 = vpop.eup %4446  ;;  %4458 = vtanh.f32 %v1808_v57  ;;  %3737 = vmatpush3.bf16.msra.mxu0 %v4237_v51  ;;  %v4239_v57 = vld [vmem:[%s4970_s21 + $0x8] sm:$0xff]   ;;  %s5156_s20 = sld [smem:[%s5192_s0 + %s4527_s17]]  }
 0x7a3   :  { %v4449_v60 = vpop.eup %4448  ;;  %3738 = vmatprep.subr.bf16.mxu0 %v4238_v55  ;;  %v2162_v50 = vld [vmem:[%s4991_s25 + $0x28] sm:$0xff] }
 0x7a4   :  { %v4451_v62 = vpop.eup %4450  ;;  %v1832_v53 = vpack.c.bf16 %v4449_v60, %v4445_v59  ;;  %v4240_v59 = vld [vmem:[%s4970_s21 + $0x50] sm:$0xff]  }
 0x7a5   :  { %v1831_v61 = vpack.c.bf16 %v4451_v62, %v4447_v56  ;;  %v4241_v56 = vld [vmem:[%s4970_s21 + $0xc0] sm:$0xff]   ;;  %v4242_v60 = vld [vmem:[%s4970_s21 + $0x10] sm:$0xff]  }
 0x7a6   :  { %3739 = vmatpush3.bf16.msra.mxu0 %v4239_v57  ;;  %v4243_v62 = vld [vmem:[%s4970_s21 + $0x80] sm:$0xff]   ;;  %v2196_v57 = vld [vmem:[%s4996_s29 + $0x38] sm:$0xff] }
 0x7a7   :  { %4069 = vmatprep.mubr.msk.bf16.mxu0 %vm620_vm3, %v1831_v61  ;;  %3740 = vmatprep.subr.bf16.mxu0 %v4240_v59  ;;  %v4245_v61 = vld [vmem:[%s4970_s21 + $0xc8] sm:$0xff]   ;;  %v4256_v59 = vld [vmem:[%s4970_s21 + $0x70] sm:$0xff]  }
 0x7a8   :  { %4070 = vmatmul.mubr.msk.bf16.gmra.mrb[72].mxu0 %vm620_vm3, %v1832_v53  ;;  %v4244_v53 = vld [vmem:[%s4970_s21 + $0x58] sm:$0xff]  }
 0x7a9   :  { %v4453_v2 = vpop.eup %4452 }
 0x7aa   :  { %v4455_v63 = vpop.eup %4454  ;;  %3741 = vmatpush3.bf16.msra.mxu0 %v4242_v60 }
 0x7ab   :  { %v4457_v5 = vpop.eup %4456  ;;  %3742 = vmatprep.subr.bf16.mxu0 %v4244_v53 }
 0x7ac   :  { %v4459_v7 = vpop.eup %4458  ;;  %v1834_v8 = vpack.c.bf16 %v4457_v5, %v4453_v2  ;;  %v4246_v2 = vld [vmem:[%s4970_s21 + $0x18] sm:$0xff]   ;;  %v4248_v5 = vld [vmem:[%s4970_s21 + $0x60] sm:$0xff]  }
 0x7ad   :  { %v1833_v14 = vpack.c.bf16 %v4459_v7, %v4455_v63  ;;  %v4247_v63 = vld [vmem:[%s4970_s21 + $0x88] sm:$0xff]   ;;  %v4249_v7 = vld [vmem:[%s4970_s21 + $0xd0] sm:$0xff]  }
 0x7ae   :  { %3743 = vmatpush3.bf16.msra.mxu0 %v4246_v2  ;;  %v4258_v2 = vld [vmem:[%s4970_s21 + $0x30] sm:$0xff]  }
 0x7af   :  { %4073 = vmatprep.mubr.msk.bf16.mxu0 %vm620_vm3, %v1833_v14  ;;  %v4251_v14 = vld [vmem:[%s4970_s21 + $0x90] sm:$0xff]   ;;  %3744 = vmatprep.subr.bf16.mxu0 %v4248_v5 }
 0x7b0   :  { %4074 = vmatmul.mubr.msk.bf16.gmra.mrb[76].mxu0 %vm620_vm3, %v1834_v8  ;;  %v4250_v8 = vld [vmem:[%s4970_s21 + $0x20] sm:$0xff]  }
 0x7b2   :  { %3745 = vmatpush3.bf16.msra.mxu0 %v4250_v8 }
 0x86b   :  { %v4063_v9 = vpop.f32.mrb[64].mxu0 }
 0x86c   :  { %v1925_v12 = vpop.f32.mrb[65].mxu0 }
 0x86d   :  { %v4064_v17 = vpop.f32.mrb[66].mxu0 }
 0x86e   :  { %v2005_v19 = vpack.c.bf16 %v4064_v17, %v4063_v9  ;;  %v1928_v20 = vpop.f32.mrb[67].mxu0  ;;  %v2157_v9 = vld [vmem:[%s4991_s25] sm:$0xff]  ;;  %v2191_v17 = vld [vmem:[%s4996_s29 + $0x10] sm:$0xff] }
 0x86f   :  { %v2004_v21 = vpack.c.bf16 %v1928_v20, %v1925_v12 }
 0x871   :  { %4077 = vmatprep.subr.bf16.mxu1 %v2004_v21 }
 0x872   :  { %4078 = vmatpush3.bf16.msra.mxu1 %v2004_v21 }
 0x873   :  { %v4067_v22 = vpop.f32.mrb[68].mxu0  ;;  %4079 = vmatprep.subr.bf16.mxu1 %v2005_v19 }
 0x874   :  { %v1941_v30 = vpop.f32.mrb[69].mxu0 }
 0x875   :  { %v4068_v25 = vpop.f32.mrb[70].mxu0 }
 0x876   :  { %v2007_v26 = vpack.c.bf16 %v4068_v25, %v4067_v22  ;;  %v1944_v28 = vpop.f32.mrb[71].mxu0  ;;  %4080 = vmatpush3.bf16.msra.mxu1 %v2005_v19  ;;  %v2160_v19 = vld [vmem:[%s4991_s25 + $0x18] sm:$0xff]  ;;  %v2189_v22 = vld [vmem:[%s4996_s29] sm:$0xff] }
 0x877   :  { %v2006_v29 = vpack.c.bf16 %v1944_v28, %v1941_v30  ;;  %v2158_v30 = vld [vmem:[%s4991_s25 + $0x8] sm:$0xff]  ;;  %v2192_v28 = vld [vmem:[%s4996_s29 + $0x18] sm:$0xff] }
 0x879   :  { %4081 = vmatprep.subr.bf16.mxu1 %v2006_v29 }
 0x87a   :  { %4082 = vmatpush3.bf16.msra.mxu1 %v2006_v29 }
 0x87b   :  { %v4071_v27 = vpop.f32.mrb[72].mxu0  ;;  %4083 = vmatprep.subr.bf16.mxu1 %v2007_v26 }
 0x87c   :  { %v1957_v35 = vpop.f32.mrb[73].mxu0 }
 0x87d   :  { %v4072_v31 = vpop.f32.mrb[74].mxu0 }
 0x87e   :  { %v2009_v40 = vpack.c.bf16 %v4072_v31, %v4071_v27  ;;  %v1960_v32 = vpop.f32.mrb[75].mxu0  ;;  %4084 = vmatpush3.bf16.msra.mxu1 %v2007_v26  ;;  %v2190_v31 = vld [vmem:[%s4996_s29 + $0x8] sm:$0xff] }
 0x87f   :  { %v2008_v33 = vpack.c.bf16 %v1960_v32, %v1957_v35 }
 0x881   :  { %4085 = vmatprep.subr.bf16.mxu1 %v2008_v33 }
 0x882   :  { %4086 = vmatpush3.bf16.msra.mxu1 %v2008_v33 }
 0x883   :  { %v4075_v34 = vpop.f32.mrb[76].mxu0  ;;  %4087 = vmatprep.subr.bf16.mxu1 %v2009_v40 }
 0x884   :  { %v1973_v36 = vpop.f32.mrb[77].mxu0 }
 0x885   :  { %v4076_v37 = vpop.f32.mrb[78].mxu0 }
 0x886   :  { %v2011_v38 = vpack.c.bf16 %v4076_v37, %v4075_v34  ;;  %v1976_v39 = vpop.f32.mrb[79].mxu0  ;;  %4088 = vmatpush3.bf16.msra.mxu1 %v2009_v40  ;;  %v4252_v37 = vld [vmem:[%s4970_s21 + $0x68] sm:$0xff]  }
 0x887   :  { %v2010_v41 = vpack.c.bf16 %v1976_v39, %v1973_v36  ;;  %v2163_v36 = vld [vmem:[%s4991_s25 + $0x30] sm:$0xff]  ;;  %v2161_v39 = vld [vmem:[%s4991_s25 + $0x20] sm:$0xff]  ;;  %3746 = vmatprep.subr.bf16.mxu0 %v4252_v37 }
 0x888   :  { %v4264_v37 = vld [vmem:[%s4970_s21 + $0xf0] sm:$0xff]  }
 0x889   :  { %4089 = vmatprep.subr.bf16.mxu1 %v2010_v41 }
 0x88a   :  { %4090 = vmatpush3.bf16.msra.mxu1 %v2010_v41  ;;  %v4254_v41 = vld [vmem:[%s4970_s21 + $0x28] sm:$0xff]  }
 0x88b   :  { %4091 = vmatprep.subr.bf16.mxu1 %v2011_v38  ;;  %3747 = vmatpush3.bf16.msra.mxu0 %v4254_v41 }
 0x88c   :  { %3748 = vmatprep.subr.bf16.mxu0 %v4256_v59 }
 0x88e   :  { %4092 = vmatpush3.bf16.msra.mxu1 %v2011_v38  ;;  %v4253_v38 = vld [vmem:[%s4970_s21 + $0xd8] sm:$0xff]  }
 0x88f   :  { %3758 = vmatprep.subr.bf16.mxu1 %v4241_v56  ;;  %v4257_v56 = vld [vmem:[%s4970_s21 + $0xe0] sm:$0xff]   ;;  %3749 = vmatpush3.bf16.msra.mxu0 %v4258_v2 }
 0x891   :  { %4094 = vmatmul.mubr.bf16.vlgmr.msra.gmra.mrb[64].mxu1 %v4229_v42  ;;  %v4255_v42 = vld [vmem:[%s4970_s21 + $0x98] sm:$0xff]  }
 0x892   :  { %4097 = vmatprep.mubr.bf16.mxu1 %v4230_v43  ;;  %3759 = vmatpush3.bf16.msra.mxu1 %v4243_v62 }
 0x893   :  { %3760 = vmatprep.subr.bf16.mxu1 %v4245_v61  ;;  %v2194_v61 = vld [vmem:[%s4996_s29 + $0x28] sm:$0xff] }
 0x896   :  { %3761 = vmatpush3.bf16.msra.mxu1 %v4247_v63  ;;  %v4259_v63 = vld [vmem:[%s4970_s21 + $0xa0] sm:$0xff]  }
 0x897   :  { %3762 = vmatprep.subr.bf16.mxu1 %v4249_v7 }
 0x899   :  { %4098 = vmatmul.mubr.bf16.gmra.mrb[68].mxu1 %v4231_v44  ;;  %v2195_v44 = vld [vmem:[%s4996_s29 + $0x30] sm:$0xff] }
 0x89a   :  { %4101 = vmatprep.mubr.bf16.mxu1 %v4232_v45  ;;  %3763 = vmatpush3.bf16.msra.mxu1 %v4251_v14  ;;  %v2164_v45 = vld [vmem:[%s4991_s25 + $0x38] sm:$0xff] }
 0x89b   :  { %3764 = vmatprep.subr.bf16.mxu1 %v4253_v38  ;;  %v4265_v38 = vld [vmem:[%s4970_s21 + $0x140] sm:$0xff]  }
 0x89e   :  { %3765 = vmatpush3.bf16.msra.mxu1 %v4255_v42 }
 0x89f   :  { %3766 = vmatprep.subr.bf16.mxu1 %v4257_v56 }
 0x8a1   :  { %4102 = vmatmul.mubr.bf16.gmra.mrb[72].mxu1 %v4233_v46 }
 0x8a2   :  { %4105 = vmatprep.mubr.bf16.mxu1 %v4234_v48  ;;  %3767 = vmatpush3.bf16.msra.mxu1 %v4259_v63 }
 0x8a9   :  { %4106 = vmatmul.mubr.bf16.gmra.mrb[76].mxu1 %v4235_v49  ;;  %v2193_v49 = vld [vmem:[%s4996_s29 + $0x20] sm:$0xff] }
 0x964   :  { %v4095_v12 = vpop.f32.mrb[64].mxu1 }
 0x965   :  { %v2175_v20 = vmul.f32 %v4095_v12, %v2159_v13  ;;  %v2094_v21 = vpop.f32.mrb[65].mxu1  ;;  %v2167_v13 = vld [vmem:[%s4991_s25 + $0x50] sm:$0xff]  ;;  %v4261_v12 = vld [vmem:[%s4970_s21 + $0xe8] sm:$0xff]  }
 0x966   :  { %v2173_v25 = vmul.f32 %v2157_v9, %v2094_v21  ;;  %v4096_v26 = vpop.f32.mrb[66].mxu1  ;;  %v4260_v9 = vld [vmem:[%s4970_s21 + $0x78] sm:$0xff]   ;;  %v4263_v21 = vld [vmem:[%s4970_s21 + $0xa8] sm:$0xff]   ;;  %3768 = vmatprep.subr.bf16.mxu1 %v4261_v12 }
 0x967   :  { %v2207_v29 = vadd.f32 %v2191_v17, %v2175_v20  ;;  %v2176_v27 = vmul.f32 %v4096_v26, %v2160_v19  ;;  %v2097_v35 = vpop.f32.mrb[67].mxu1  ;;  %v2165_v19 = vld [vmem:[%s4991_s25 + $0x40] sm:$0xff]  ;;  %v4262_v20 = vld [vmem:[%s4970_s21 + $0x38] sm:$0xff]   ;;  %3750 = vmatprep.subr.bf16.mxu0 %v4260_v9  ;;  %3769 = vmatpush3.bf16.msra.mxu1 %v4263_v21  ;;  %v2202_v21 = vld [vmem:[%s4996_s29 + $0x68] sm:$0xff] }
 0x968   :  { %v2205_v40 = vadd.f32 %v2189_v22, %v2173_v25  ;;  %v2174_v32 = vmul.f32 %v2158_v30, %v2097_v35  ;;  %v2199_v25 = vld [vmem:[%s4996_s29 + $0x50] sm:$0xff]  ;;  %v2168_v26 = vld [vmem:[%s4991_s25 + $0x58] sm:$0xff]  ;;  %3751 = vmatpush3.bf16.msra.mxu0 %v4262_v20  ;;  %3770 = vmatprep.subr.bf16.mxu1 %v4264_v37 }
 0x969   :  { %4460 = vtanh.f32 %v2207_v29  ;;  %v2208_v33 = vadd.f32 %v2192_v28, %v2176_v27  ;;  %3780 = vmatprep.subr.bf16.mxu0 %v4265_v38  ;;  %v2204_v9 = vld [vmem:[%s4996_s29 + $0x78] sm:$0xff] }
 0x96a   :  { %4462 = vtanh.f32 %v2205_v40  ;;  %v2206_v34 = vadd.f32 %v2190_v31, %v2174_v32  ;;  %v2197_v31 = vld [vmem:[%s4996_s29 + $0x40] sm:$0xff]  ;;  %v2166_v40 = vld [vmem:[%s4991_s25 + $0x48] sm:$0xff] }
 0x96b   :  { %4464 = vtanh.f32 %v2208_v33 }
 0x96c   :  { %v4099_v43 = vpop.f32.mrb[68].mxu1  ;;  %4466 = vtanh.f32 %v2206_v34 }
 0x96d   :  { %v2179_v46 = vmul.f32 %v4099_v43, %v2163_v36  ;;  %v2110_v48 = vpop.f32.mrb[69].mxu1  ;;  %v2200_v36 = vld [vmem:[%s4996_s29 + $0x58] sm:$0xff] }
 0x96e   :  { %v2177_v51 = vmul.f32 %v2161_v39, %v2110_v48  ;;  %v4100_v55 = vpop.f32.mrb[70].mxu1 }
 0x96f   :  { %v2211_v60 = vadd.f32 %v2195_v44, %v2179_v46  ;;  %v2180_v62 = vmul.f32 %v4100_v55, %v2164_v45  ;;  %v2113_v53 = vpop.f32.mrb[71].mxu1  ;;  %v2198_v44 = vld [vmem:[%s4996_s29 + $0x48] sm:$0xff]  ;;  %v2169_v55 = vld [vmem:[%s4991_s25 + $0x60] sm:$0xff] }
 0x970   :  { %v2209_v5 = vadd.f32 %v2193_v49, %v2177_v51  ;;  %v2178_v7 = vmul.f32 %v2162_v50, %v2113_v53  ;;  %v2171_v50 = vld [vmem:[%s4991_s25 + $0x70] sm:$0xff] }
 0x971   :  { %4468 = vtanh.f32 %v2211_v60  ;;  %v2212_v8 = vadd.f32 %v2196_v57, %v2180_v62  ;;  %v4268_v57 = vld [vmem:[%s4970_s21 + $0xf8] sm:$0xff]   ;;  %v2203_v60 = vld [vmem:[%s4996_s29 + $0x70] sm:$0xff] }
 0x972   :  { %4470 = vtanh.f32 %v2209_v5  ;;  %v2210_v14 = vadd.f32 %v2194_v61, %v2178_v7  ;;  %v2172_v62 = vld [vmem:[%s4991_s25 + $0x78] sm:$0xff]  ;;  %v2201_v5 = vld [vmem:[%s4996_s29 + $0x60] sm:$0xff]  ;;  %v2170_v7 = vld [vmem:[%s4991_s25 + $0x68] sm:$0xff]  ;;  %s4530_s25 = smov 27   ;;  %s4531_s29 = smov 28  }
 0x973   :  { %v4461_v17 = vpop.eup %4460  ;;  %4472 = vtanh.f32 %v2212_v8  ;;  %v4270_v61 = vld [vmem:[%s4970_s21 + $0xb8] sm:$0xff]   ;;  %s3395_s28 = sld [smem:[%s5192_s0 + %s4530_s25]]  }
 0x974   :  { %v4463_v22 = vpop.eup %4462  ;;  %v4103_v30 = vpop.f32.mrb[72].mxu1  ;;  %v2239_v28 = vadd.f32 %v4461_v17, %v4812_v24  ;;  %4474 = vtanh.f32 %v2210_v14  ;;  %s3396_s2 = sld [smem:[%s5192_s0 + %s4531_s29]]  }
 0x975   :  { %v4465_v29 = vpop.eup %4464  ;;  %v2183_v27 = vmul.f32 %v4103_v30, %v2167_v13  ;;  %v2126_v35 = vpop.f32.mrb[73].mxu1  ;;  %v2237_v32 = vadd.f32 %v4463_v22, %v4806_v18  ;;  %v4266_v18 = vld [vmem:[%s4970_s21 + $0xb0] sm:$0xff]   ;;  %v4273_v22 = vld [vmem:[%s4970_s21 + $0x1c0] sm:$0xff]  }
 0x976   :  { %v2181_v33 = vmul.f32 %v2165_v19, %v2126_v35  ;;  %v4104_v34 = vpop.f32.mrb[74].mxu1  ;;  %v2240_v24 = vadd.f32 %v4465_v29, %v4801_v6  ;;  %2260 = vst.msk [vmem:[#allocation2 + $0x8] sm:$0xff] %vm620_vm3, %v2239_v28  ;;  %v4467_v39 = vpop.eup %4466  ;;  %3771 = vmatpush3.bf16.msra.mxu1 %v4266_v18 }
 0x977   :  { %v2215_v41 = vadd.f32 %v2199_v25, %v2183_v27  ;;  %v2184_v42 = vmul.f32 %v4104_v34, %v2168_v26  ;;  %v2129_v43 = vpop.f32.mrb[75].mxu1  ;;  %2253 = vst.msk [vmem:[#allocation2] sm:$0xff] %vm620_vm3, %v2237_v32  ;;  %v2238_v49 = vadd.f32 %v4467_v39, %v4809_v23  ;;  %3772 = vmatprep.subr.bf16.mxu1 %v4268_v57  ;;  %v4276_v57 = vld [vmem:[%s4970_s21 + $0x158] sm:$0xff]  }
 0x978   :  { %v2213_v45 = vadd.f32 %v2197_v31, %v2181_v33  ;;  %v2182_v46 = vmul.f32 %v2166_v40, %v2129_v43  ;;  %2262 = vrot.lane.b32.xlu0 %v2240_v24, %s4520_s30  ;;  %v4269_v43 = vld [vmem:[%s4970_s21 + $0x148] sm:$0xff]  }
 0x979   :  { %4476 = vtanh.f32 %v2215_v41  ;;  %v2216_v6 = vadd.f32 %v2200_v36, %v2184_v42  ;;  %v4267_v41 = vld [vmem:[%s4970_s21 + $0x100] sm:$0xff]  }
 0x97a   :  { %4478 = vtanh.f32 %v2213_v45  ;;  %v2214_v48 = vadd.f32 %v2198_v44, %v2182_v46  ;;  %3773 = vmatpush3.bf16.msra.mxu1 %v4270_v61  ;;  %v4271_v45 = vld [vmem:[%s4970_s21 + $0x108] sm:$0xff]  }
 0x97b   :  { %v4469_v51 = vpop.eup %4468  ;;  %4480 = vtanh.f32 %v2216_v6  ;;  %3802 = vmatprep.subr.bf16.mxu1 %v4273_v22  ;;  %v4292_v22 = vld [vmem:[%s4970_s21 + $0x178] sm:$0xff]  }
 0x97c   :  { %v4471_v59 = vpop.eup %4470  ;;  %4482 = vtanh.f32 %v2214_v48  ;;  %2255 = vrot.lane.b32.xlu0 %v2238_v49, %s4520_s30  ;;  %v4107_v56 = vpop.f32.mrb[76].mxu1  ;;  %v2243_v53 = vadd.f32 %v4469_v51, %v4838_v58  ;;  %v4272_v48 = vld [vmem:[%s4970_s21 + $0x150] sm:$0xff]   ;;  %v4275_v51 = vld [vmem:[%s4970_s21 + $0x180] sm:$0xff]  }
 0x97d   :  { %v4473_v2 = vpop.eup %4472  ;;  %v2187_v23 = vmul.f32 %v4107_v56, %v2171_v50  ;;  %v2142_v63 = vpop.f32.mrb[77].mxu1  ;;  %v2241_v8 = vadd.f32 %v4471_v59, %v4832_v52  ;;  %v4274_v50 = vld [vmem:[%s4970_s21 + $0x110] sm:$0xff]   ;;  %v4277_v59 = vld [vmem:[%s4970_s21 + $0x1c8] sm:$0xff]  }
 0x97e   :  { %v2185_v14 = vmul.f32 %v2169_v55, %v2142_v63  ;;  %v4108_v13 = vpop.f32.mrb[78].mxu1  ;;  %v2244_v12 = vadd.f32 %v4473_v2, %v4828_v47  ;;  %2272 = vst.msk [vmem:[#allocation2 + $0x18] sm:$0xff] %vm620_vm3, %v2243_v53  ;;  %v4475_v58 = vpop.eup %4474  ;;  %v4279_v53 = vld [vmem:[%s4970_s21 + $0x188] sm:$0xff]   ;;  %v4281_v63 = vld [vmem:[%s4970_s21 + $0x1d0] sm:$0xff]  }
 0x97f   :  { %v2219_v17 = vadd.f32 %v2203_v60, %v2187_v23  ;;  %v2188_v19 = vmul.f32 %v4108_v13, %v2172_v62  ;;  %v2145_v20 = vpop.f32.mrb[79].mxu1  ;;  %2266 = vst.msk [vmem:[#allocation2 + $0x10] sm:$0xff] %vm620_vm3, %v2241_v8  ;;  %v2242_v26 = vadd.f32 %v4475_v58, %v4835_v54  ;;  %v4278_v60 = vld [vmem:[%s4970_s21 + $0x118] sm:$0xff]   ;;  %v4280_v23 = vld [vmem:[%s4970_s21 + $0x160] sm:$0xff]   ;;  %v4284_v8 = vld [vmem:[%s4970_s21 + $0x168] sm:$0xff]  }
 0x980   :  { %v2217_v30 = vadd.f32 %v2201_v5, %v2185_v14  ;;  %v2186_v25 = vmul.f32 %v2170_v7, %v2145_v20  ;;  %2274 = vrot.lane.b32.xlu1 %v2244_v12, %s4520_s30  ;;  %v4282_v5 = vld [vmem:[%s4970_s21 + $0x120] sm:$0xff]   ;;  %v4283_v7 = vld [vmem:[%s4970_s21 + $0x190] sm:$0xff]   ;;  %v4285_v14 = vld [vmem:[%s4970_s21 + $0x1d8] sm:$0xff]  }
 0x981   :  { %4484 = vtanh.f32 %v2219_v17  ;;  %v2220_v52 = vadd.f32 %v2204_v9, %v2188_v19  ;;  %v4286_v13 = vld [vmem:[%s4970_s21 + $0x128] sm:$0xff]   ;;  %v4287_v9 = vld [vmem:[%s4970_s21 + $0x198] sm:$0xff]   ;;  %v4288_v17 = vld [vmem:[%s4970_s21 + $0x170] sm:$0xff]  }
 0x982   :  { %4486 = vtanh.f32 %v2217_v30  ;;  %v2218_v47 = vadd.f32 %v2202_v21, %v2186_v25  ;;  %v4289_v19 = vld [vmem:[%s4970_s21 + $0x1e0] sm:$0xff]   ;;  %v4290_v20 = vld [vmem:[%s4970_s21 + $0x130] sm:$0xff]   ;;  %v4293_v30 = vld [vmem:[%s4970_s21 + $0x1e8] sm:$0xff]  }
 0x983   :  { %v4477_v28 = vpop.eup %4476  ;;  %4488 = vtanh.f32 %v2220_v52  ;;  %v4291_v21 = vld [vmem:[%s4970_s21 + $0x1a0] sm:$0xff]   ;;  %v4294_v25 = vld [vmem:[%s4970_s21 + $0x138] sm:$0xff]   ;;  %v4295_v52 = vld [vmem:[%s4970_s21 + $0x1a8] sm:$0xff]  }
 0x984   :  { %v4479_v29 = vpop.eup %4478  ;;  %4490 = vtanh.f32 %v2218_v47  ;;  %2268 = vrot.lane.b32.xlu1 %v2242_v26, %s4520_s30  ;;  %v2247_v27 = vadd.f32 %v4477_v28, %v4856_v4  ;;  %v4296_v47 = vld [vmem:[%s4970_s21 + $0x1f0] sm:$0xff]  }
 0x985   :  { %v4481_v35 = vpop.eup %4480  ;;  %v2245_v31 = vadd.f32 %v4479_v29, %v4850_v1  ;;  %v4297_v28 = vld [vmem:[%s4970_s21 + $0x1b0] sm:$0xff]  }
 0x986   :  { %v4483_v40 = vpop.eup %4482  ;;  %v2248_v32 = vadd.f32 %v4481_v35, %v4847_v0  ;;  %2284 = vst.msk [vmem:[#allocation2 + $0x28] sm:$0xff] %vm620_vm3, %v2247_v27  ;;  %v4298_v27 = vld [vmem:[%s4970_s21 + $0x1f8] sm:$0xff]  }
 0x987   :  { %v2246_v33 = vadd.f32 %v4483_v40, %v4853_v3  ;;  %2278 = vst.msk [vmem:[#allocation2 + $0x20] sm:$0xff] %vm620_vm3, %v2245_v31  ;;  %v4299_v35 = vld [vmem:[%s4970_s21 + $0x1b8] sm:$0xff]   ;;  %s4528_s21 = smov 25  }
 0x988   :  { %2286 = vrot.lane.b32.xlu0 %v2248_v32, %s4520_s30  ;;  %v4521_v32 = vmov 0.0   ;;  %s3393_s24 = sld [smem:[%s5192_s0 + %s4528_s21]]  }
 0x989   :  { %2280 = vrot.lane.b32.xlu1 %v2246_v33, %s4520_s30 }
 0x98b   :  { %v4485_v54 = vpop.eup %4484 }
 0x98c   :  { %v4487_v34 = vpop.eup %4486  ;;  %v2251_v4 = vadd.f32 %v4485_v54, %v4874_v11 }
 0x98d   :  { %v4489_v36 = vpop.eup %4488  ;;  %v2249_v1 = vadd.f32 %v4487_v34, %v4868_v16 }
 0x98e   :  { %v4491_v24 = vpop.eup %4490  ;;  %v2252_v0 = vadd.f32 %v4489_v36, %v4865_v15  ;;  %2296 = vst.msk [vmem:[#allocation2 + $0x38] sm:$0xff] %vm620_vm3, %v2251_v4 }
 0x98f   :  { %v2250_v3 = vadd.f32 %v4491_v24, %v4871_v10  ;;  %2290 = vst.msk [vmem:[#allocation2 + $0x30] sm:$0xff] %vm620_vm3, %v2249_v1 }
 0x990   :  { %2298 = vrot.lane.b32.xlu0 %v2252_v0, %s4520_s30 }
 0x991   :  { %2292 = vrot.lane.b32.xlu1 %v2250_v3, %s4520_s30 }
 0x9ea   :  { %v2263_v11 = vpop.permute.xlu0 %2262 }
 0x9eb   :  { %2265 = vst.msk [vmem:[#allocation2 + $0x8] sm:$0xff] %vm2258_vm4, %v2263_v11 }
 0x9ee   :  { %v2256_v16 = vpop.permute.xlu0 %2255 }
 0x9ef   :  { %2259 = vst.msk [vmem:[#allocation2] sm:$0xff] %vm2258_vm4, %v2256_v16 }
 0x9f2   :  { %v2275_v15 = vpop.permute.xlu1 %2274  ;;  %v2303_v37 = vld [vmem:[#allocation2 + $0x8] sm:$0xff] }
 0x9f3   :  { %2277 = vst.msk [vmem:[#allocation2 + $0x18] sm:$0xff] %vm2258_vm4, %v2275_v15  ;;  %v2311_v10 = vpack.c.bf16 %v2303_v37, %v2303_v37 }
 0x9f5   :  { %2862 = vmatprep.mubr.bf16.mxu0 %v2311_v10 }
 0x9f6   :  { %v2269_v38 = vpop.permute.xlu1 %2268  ;;  %v2302_v39 = vld [vmem:[#allocation2] sm:$0xff] }
 0x9f7   :  { %2271 = vst.msk [vmem:[#allocation2 + $0x10] sm:$0xff] %vm2258_vm4, %v2269_v38  ;;  %v2310_v42 = vpack.c.bf16 %v2302_v39, %v2302_v39 }
 0x9f9   :  { %2863 = vmatmul.mubr.bf16.vlgmr.msra.gmra.mrb[80].mxu0 %v2310_v42 }
 0x9fa   :  { %3781 = vmatpush3.bf16.msra.mxu0 %v4267_v41  ;;  %v2287_v44 = vpop.permute.xlu0 %2286  ;;  %v2305_v18 = vld [vmem:[#allocation2 + $0x18] sm:$0xff] }
 0x9fb   :  { %2289 = vst.msk [vmem:[#allocation2 + $0x28] sm:$0xff] %vm2258_vm4, %v2287_v44  ;;  %v2281_v46 = vpop.permute.xlu1 %2280  ;;  %3782 = vmatprep.subr.bf16.mxu0 %v4269_v43  ;;  %v2313_v6 = vpack.c.bf16 %v2305_v18, %v2305_v18 }
 0x9fc   :  { %2283 = vst.msk [vmem:[#allocation2 + $0x20] sm:$0xff] %vm2258_vm4, %v2281_v46 }
 0x9fd   :  { %2902 = vmatprep.mubr.bf16.mxu1 %v2313_v6 }
 0x9fe   :  { %3783 = vmatpush3.bf16.msra.mxu0 %v4271_v45  ;;  %v2304_v49 = vld [vmem:[#allocation2 + $0x10] sm:$0xff]  ;;  %v3570_v45 = vld [vmem:[%s3390_s8] ss:$0 sm:$0xff] }
 0x9ff   :  { %3784 = vmatprep.subr.bf16.mxu0 %v4272_v48  ;;  %v2312_v55 = vpack.c.bf16 %v2304_v49, %v2304_v49  ;;  %v3571_v48 = vld [vmem:[%s3391_s12] ss:$0 sm:$0xff] }
 0xa01   :  { %2903 = vmatmul.mubr.bf16.vlgmr.msra.gmra.mrb[80].mxu1 %v2312_v55  ;;  %v4300_v55 = vld [vmem:[%s5124_s4] sm:$0xff]  }
 0xa02   :  { %3785 = vmatpush3.bf16.msra.mxu0 %v4274_v50  ;;  %3803 = vmatpush3.bf16.msra.mxu1 %v4275_v51  ;;  %v2299_v56 = vpop.permute.xlu0 %2298  ;;  %v2307_v62 = vld [vmem:[#allocation2 + $0x28] sm:$0xff]  ;;  %v3008_v51 = vld [vmem:[%s3392_s16] sm:$0xff] }
 0xa03   :  { %2301 = vst.msk [vmem:[#allocation2 + $0x38] sm:$0xff] %vm2258_vm4, %v2299_v56  ;;  %v2293_v61 = vpop.permute.xlu1 %2292  ;;  %3786 = vmatprep.subr.bf16.mxu0 %v4276_v57  ;;  %3804 = vmatprep.subr.bf16.mxu1 %v4277_v59  ;;  %v2315_v2 = vpack.c.bf16 %v2307_v62, %v2307_v62  ;;  %v2306_v26 = vld [vmem:[#allocation2 + $0x20] sm:$0xff]  ;;  %v4301_v59 = vld [vmem:[%s5124_s4 + $0x8] sm:$0xff]   ;;  %v4302_v56 = vld [vmem:[%s5124_s4 + $0x10] sm:$0xff]  }
 0xa04   :  { %2295 = vst.msk [vmem:[#allocation2 + $0x30] sm:$0xff] %vm2258_vm4, %v2293_v61  ;;  %v2314_v29 = vpack.c.bf16 %v2306_v26, %v2306_v26  ;;  %v4304_v62 = vld [vmem:[%s5124_s4 + $0x20] sm:$0xff]   ;;  %v4306_v61 = vld [vmem:[%s5124_s4 + $0x30] sm:$0xff]  }
 0xa05   :  { %2942 = vmatprep.mubr.bf16.mxu0 %v2315_v2  ;;  %v4307_v2 = vld [vmem:[%s5124_s4 + $0x38] sm:$0xff]  }
 0xa06   :  { %3787 = vmatpush3.bf16.msra.mxu0 %v4278_v60  ;;  %3805 = vmatpush3.bf16.msra.mxu1 %v4279_v53  ;;  %v4303_v60 = vld [vmem:[%s5124_s4 + $0x18] sm:$0xff]   ;;  %v4305_v53 = vld [vmem:[%s5124_s4 + $0x28] sm:$0xff]  }
 0xa07   :  { %3788 = vmatprep.subr.bf16.mxu0 %v4280_v23  ;;  %3806 = vmatprep.subr.bf16.mxu1 %v4281_v63  ;;  %v4308_v23 = vld [vmem:[%s5156_s20] ss:$8 sps:$4 sm:$0xff]   ;;  %v4310_v63 = vld [vmem:[%s5156_s20 + $0x4] ss:$8 sps:$4 sm:$0xff]   ;;  %v4331_v26 = vld [vmem:[%s5156_s20 + $0x74] ss:$8 sps:$4 sm:$0xff]  }
 0xa0a   :  { %3789 = vmatpush3.bf16.msra.mxu0 %v4282_v5  ;;  %3807 = vmatpush3.bf16.msra.mxu1 %v4283_v7  ;;  %v2309_v12 = vld [vmem:[#allocation2 + $0x38] sm:$0xff] }
 0xa0b   :  { %3790 = vmatprep.subr.bf16.mxu0 %v4284_v8  ;;  %3808 = vmatprep.subr.bf16.mxu1 %v4285_v14  ;;  %v2317_v58 = vpack.c.bf16 %v2309_v12, %v2309_v12  ;;  %v2308_v31 = vld [vmem:[#allocation2 + $0x30] sm:$0xff]  ;;  %v4316_v8 = vld [vmem:[%s5156_s20 + $0x24] ss:$8 sps:$4 sm:$0xff]   ;;  %v4314_v14 = vld [vmem:[%s5156_s20 + $0x20] ss:$8 sps:$4 sm:$0xff]  }
 0xa0c   :  { %v2316_v40 = vpack.c.bf16 %v2308_v31, %v2308_v31  ;;  %v4313_v5 = vld [vmem:[%s5156_s20 + $0x14] ss:$8 sps:$4 sm:$0xff]   ;;  %v4311_v7 = vld [vmem:[%s5156_s20 + $0x10] ss:$8 sps:$4 sm:$0xff]   ;;  %v3084_v12 = vld [vmem:[%s3393_s24] sm:$0xff] }
 0xa0d   :  { %2982 = vmatprep.mubr.bf16.mxu1 %v2317_v58  ;;  %v3582_v31 = vld [vmem:[%s3396_s2] ss:$0 sm:$0xff] }
 0xa0e   :  { %3791 = vmatpush3.bf16.msra.mxu0 %v4286_v13  ;;  %3809 = vmatpush3.bf16.msra.mxu1 %v4287_v9  ;;  %v4319_v13 = vld [vmem:[%s5156_s20 + $0x34] ss:$8 sps:$4 sm:$0xff]   ;;  %v4317_v9 = vld [vmem:[%s5156_s20 + $0x30] ss:$8 sps:$4 sm:$0xff]  }
 0xa0f   :  { %3792 = vmatprep.subr.bf16.mxu0 %v4288_v17  ;;  %3810 = vmatprep.subr.bf16.mxu1 %v4289_v19 }
 0xa12   :  { %3793 = vmatpush3.bf16.msra.mxu0 %v4290_v20  ;;  %3811 = vmatpush3.bf16.msra.mxu1 %v4291_v21  ;;  %v4322_v21 = vld [vmem:[%s5156_s20 + $0x44] ss:$8 sps:$4 sm:$0xff]  }
 0xa13   :  { %3794 = vmatprep.subr.bf16.mxu0 %v4292_v22  ;;  %3812 = vmatprep.subr.bf16.mxu1 %v4293_v30  ;;  %v4320_v22 = vld [vmem:[%s5156_s20 + $0x40] ss:$8 sps:$4 sm:$0xff]   ;;  %v4325_v30 = vld [vmem:[%s5156_s20 + $0x54] ss:$8 sps:$4 sm:$0xff]  }
 0xa16   :  { %3795 = vmatpush3.bf16.msra.mxu0 %v4294_v25  ;;  %3813 = vmatpush3.bf16.msra.mxu1 %v4295_v52  ;;  %v4323_v25 = vld [vmem:[%s5156_s20 + $0x50] ss:$8 sps:$4 sm:$0xff]   ;;  %v4328_v52 = vld [vmem:[%s5156_s20 + $0x64] ss:$8 sps:$4 sm:$0xff]  }
 0xa17   :  { %3814 = vmatprep.subr.bf16.mxu1 %v4296_v47  ;;  %4109 = vmatprep.subr.mxu0 %v4521_v32  ;;  %v4326_v47 = vld [vmem:[%s5156_s20 + $0x60] ss:$8 sps:$4 sm:$0xff]  }
 0xa19   :  { %2943 = vmatmul.mubr.bf16.vlgmr.msra.gmra.mrb[84].mxu0 %v2314_v29  ;;  %v4529_v29 = vmov 0  }
 0xa1a   :  { %3815 = vmatpush3.bf16.msra.mxu1 %v4297_v28  ;;  %4111 = vmatprep.mubr.msk.f32.mxu0 %vm4522_vm5, %v4521_v32  ;;  %v4329_v28 = vld [vmem:[%s5156_s20 + $0x70] ss:$8 sps:$4 sm:$0xff]  }
 0xa1b   :  { %3816 = vmatprep.subr.bf16.mxu1 %v4298_v27  ;;  %v3581_v27 = vld [vmem:[%s3395_s28] ss:$0 sm:$0xff] }
 0xa1e   :  { %3817 = vmatpush3.bf16.msra.mxu1 %v4299_v35 }
 0xa1f   :  { %3317 = vmatprep.subr.bf16.mxu1 %v4310_v63 }
 0xa21   :  { %2983 = vmatmul.mubr.bf16.vlgmr.msra.gmra.mrb[84].mxu1 %v2316_v40 }
 0xa22   :  { %3318 = vmatpush1.bf16.msra.mxu1 %v4308_v23  ;;  %3349 = vmatprep.mubr.bf16.mxu1 %v4529_v29 }
 0xa23   :  { %3319 = vmatprep.subr.bf16.mxu1 %v4313_v5 }
 0xa26   :  { %3320 = vmatpush1.bf16.msra.mxu1 %v4311_v7 }
 0xa27   :  { %3321 = vmatprep.subr.bf16.mxu1 %v4316_v8 }
 0xa2a   :  { %3322 = vmatpush1.bf16.msra.mxu1 %v4314_v14 }
 0xa2b   :  { %3323 = vmatprep.subr.bf16.mxu1 %v4319_v13 }
 0xa2e   :  { %3324 = vmatpush1.bf16.msra.mxu1 %v4317_v9 }
 0xa2f   :  { %3325 = vmatprep.subr.bf16.mxu1 %v4322_v21 }
 0xa32   :  { %3326 = vmatpush1.bf16.msra.mxu1 %v4320_v22 }
 0xa33   :  { %3327 = vmatprep.subr.bf16.mxu1 %v4325_v30 }
 0xa36   :  { %3328 = vmatpush1.bf16.msra.mxu1 %v4323_v25 }
 0xa37   :  { %3329 = vmatprep.subr.bf16.mxu1 %v4328_v52 }
 0xa3a   :  { %3330 = vmatpush1.bf16.msra.mxu1 %v4326_v47 }
 0xa3b   :  { %3331 = vmatprep.subr.bf16.mxu1 %v4331_v26 }
 0xa3e   :  { %3332 = vmatpush1.bf16.msra.mxu1 %v4329_v28 }
 0xacc   :  { %v3752_v33 = vpop.f32.mrb[80].mxu0 }
 0xacd   :  { %v3753_v54 = vpop.f32.mrb[81].mxu0 }
 0xace   :  { %v3754_v34 = vadd.f32 %v3753_v54, %v3752_v33  ;;  %v3755_v4 = vpop.f32.mrb[82].mxu0 }
 0xacf   :  { %v3756_v36 = vpop.f32.mrb[83].mxu0 }
 0xad4   :  { %v3774_v1 = vpop.f32.mrb[80].mxu1 }
 0xad5   :  { %v3775_v24 = vpop.f32.mrb[81].mxu1 }
 0xad6   :  { %v3776_v0 = vadd.f32 %v3775_v24, %v3774_v1  ;;  %v3777_v3 = vpop.f32.mrb[82].mxu1  ;;  %v3227_v1 = vlaneseq }
 0xad7   :  { %v3778_v11 = vpop.f32.mrb[83].mxu1  ;;  %v3225_v3 = vld [vmem:[%s3398_s6] sm:$0x3] }
 0xad8   :  { %v2905_v16 = vadd.f32 %v3776_v0, %v3754_v34  ;;  %v3228_v24 = vshrl.u32 %v3227_v1, 7 }
 0xada   :  { %v3233_v0 = vsub.s32 1, %v3228_v24 }
 0xadc   :  { %v3234_v11 = vrot.slane %v3225_v3, %v3233_v0 }
 0xaec   :  { %v3796_v15 = vpop.f32.mrb[84].mxu0 }
 0xaed   :  { %v3797_v37 = vpop.f32.mrb[85].mxu0 }
 0xaee   :  { %v3798_v10 = vadd.f32 %v3797_v37, %v3796_v15  ;;  %v3799_v38 = vpop.f32.mrb[86].mxu0 }
 0xaef   :  { %v3800_v39 = vpop.f32.mrb[87].mxu0 }
 0xaf0   :  { %v2945_v41 = vadd.f32 %v3798_v10, %v2905_v16 }
 0xaf4   :  { %v3818_v42 = vpop.f32.mrb[84].mxu1 }
 0xaf5   :  { %v3819_v43 = vpop.f32.mrb[85].mxu1 }
 0xaf6   :  { %v3820_v44 = vadd.f32 %v3819_v43, %v3818_v42  ;;  %v3821_v18 = vpop.f32.mrb[86].mxu1  ;;  %v3229_v42 = vsub.s32 0, %v3228_v24 }
 0xaf7   :  { %v3822_v46 = vpop.f32.mrb[87].mxu1 }
 0xaf8   :  { %v2985_v6 = vadd.f32 %v3820_v44, %v2945_v41  ;;  %v3230_v43 = vrot.slane %v3225_v3, %v3229_v42  ;;  %v3361_v44 = vld [vmem:[%s3399_s10] sm:$0xff] }
 0xafa   :  { %v2997_v49 = vmul.f32 %v3570_v45, %v2985_v6 }
 0xafc   :  { %v3005_v50 = vadd.f32 %v3571_v48, %v2997_v49 }
 0xafe   :  { %4492 = vtanh.f32 %v3005_v50 }
 0xb08   :  { %v4493_v57 = vpop.eup %4492 }
 0xb09   :  { %4110 = vmatpush3.msra.mxu0 %v4493_v57 }
 0xb0a   :  { %4112 = vmatmul.mubr.msk.f32.vlgmr.msra.gmra.mrb[88].mxu0 %vm3010_vm6, %v3008_v51  ;;  %4114 = vmatprep.subr.bf16.mxu0 %v4521_v32 }
 0xb0b   :  { %4115 = vmatpush3.bf16.msra.mxu0 %v4300_v55  ;;  %4130 = vmatprep.mubr.msk.bf16.mxu0 %vm4522_vm5, %v4521_v32 }
 0xb0c   :  { %4116 = vmatprep.subr.bf16.mxu0 %v4521_v32 }
 0xb0f   :  { %4117 = vmatpush3.bf16.msra.mxu0 %v4301_v59 }
 0xb10   :  { %4118 = vmatprep.subr.bf16.mxu0 %v4521_v32 }
 0xb13   :  { %4119 = vmatpush3.bf16.msra.mxu0 %v4302_v56 }
 0xb14   :  { %4120 = vmatprep.subr.bf16.mxu0 %v4521_v32 }
 0xb17   :  { %4121 = vmatpush3.bf16.msra.mxu0 %v4303_v60 }
 0xb18   :  { %4122 = vmatprep.subr.bf16.mxu0 %v4521_v32 }
 0xb1b   :  { %4123 = vmatpush3.bf16.msra.mxu0 %v4304_v62 }
 0xb1c   :  { %4124 = vmatprep.subr.bf16.mxu0 %v4521_v32 }
 0xb1f   :  { %4125 = vmatpush3.bf16.msra.mxu0 %v4305_v53 }
 0xb20   :  { %4126 = vmatprep.subr.bf16.mxu0 %v4521_v32 }
 0xb23   :  { %4127 = vmatpush3.bf16.msra.mxu0 %v4306_v61 }
 0xb24   :  { %4128 = vmatprep.subr.bf16.mxu0 %v4521_v32 }
 0xb27   :  { %4129 = vmatpush3.bf16.msra.mxu0 %v4307_v2 }
 0xbdd   :  { %v3080_v58 = vpop.f32.mrb[88].mxu0 }
 0xbde   :  { %v3085_v17 = vmul.f32 %v3084_v12, %v3080_v58  ;;  %v4113_v19 = vpop.f32.mrb[89].mxu0 }
 0xbe0   :  { %v3086_v20 = vpack.c.bf16 %v3085_v17, %v3085_v17 }
 0xbe2   :  { %4131 = vmatmul.mubr.bf16.vlgmr.msra.gmra.mrb[92].mxu0 %v3086_v20 }
 0xcb5   :  { %v3185_v35 = vpop.f32.mrb[92].mxu0 }
 0xcb6   :  { %v3198_v40 = vmul.f32 %v3581_v27, %v3185_v35  ;;  %v4132_v32 = vpop.f32.mrb[93].mxu0 }
 0xcb7   :  { %v3188_v33 = vpop.f32.mrb[94].mxu0 }
 0xcb8   :  { %v3206_v54 = vadd.f32 %v3582_v31, %v3198_v40  ;;  %v4133_v34 = vpop.f32.mrb[95].mxu0 }
 0xcba   :  { %4494 = vtanh.f32 %v3206_v54 }
 0xcc4   :  { %v4495_v4 = vpop.eup %4494 }
 0xcc5   :  { %v3208_v36 = vpack.c.bf16 %v4495_v4, %v4495_v4 }
 0xcc7   :  { %3350 = vmatmul.mubr.bf16.vlgmr.msra.gmra.mrb[88].mxu1 %v3208_v36 }
 0xd9a   :  { %v3351_v16 = vpop.f32.mrb[88].mxu1 }
 0xd9b   :  { %v3353_v15 = vpop.f32.mrb[89].mxu1  ;;  %v3352_v45 = vadd.f32 %v3351_v16, %v3230_v43 }
 0xd9c   :  { %v3354_v37 = vadd.f32 %v3353_v15, %v3234_v11  ;;  %v3355_v10 = vpop.f32.mrb[90].mxu1 }
 0xd9d   :  { %v3356_v38 = vpop.f32.mrb[91].mxu1 }
 0xd9e   :  { %v3358_v39 = vmul.f32 0.5, %v3354_v37 }
 0xda0   :  { %v3359_v41 = vmul.f32 1.442695, %v3358_v39 }
 0xda2   :  { %4496 = vpow2.f32 %v3359_v41 }
 0xdac   :  { %v4497_v18 = vpop.eup %4496 }
 0xdad   :  { %v3362_v46 = vmul.f32 %v4497_v18, %v3361_v44 }
 0xdaf   :  { %v3363_v6 = vadd.f32 %v3362_v46, %v3352_v45 }
 0xdb1   :  { %3364 = vst [vmem:[%s3400_s14] sm:$0xff] %v3363_v6 }

</bundles_post_ra>
